<compile_context>
chip_gen: v5e
topology: v5e:2x2
jax: 0.10.0
libtpu: 0.0.40
codegen_flags: <defaults>
</compile_context>

<pallas_src>
import functools

import jax
import jax.numpy as jnp
import numpy as np
from jax.experimental import pallas as pl
from jax.experimental.pallas import tpu as pltpu

_NEG_BIG = -1e30  # effectively -inf for f32 softmax masking (exp underflows to 0)


def _round_up(a, m):
    return ((a + m - 1) // m) * m


def _fused_kernel(x_ref, w1_ref, b1_ref, w2_ref, b2_ref, m_ref,
                  yins_ref, ybag_ref):
    """Fused instance + partial bag path.

    x_ref   : [TILE_N, C*HW] bf16   instance tile (lane dense, streamed)
    w1_ref  : [C*HW, 512]    f32    pool-folded backbone projection (resident)
    b1_ref  : [1, 512]       f32
    w2_ref  : [512, C_PAD]   f32    classifier (class axis padded to 128)
    b2_ref  : [1, C_PAD]     f32    padded classes biased to -1e30
    m_ref   : [B_PAD, TILE_N] f32   membership/mean matrix tile (1/len[b] or 0)
    yins_ref: [TILE_N, C_PAD] f32   per-instance softmax output (lane dense)
    ybag_ref: [B_PAD, C_PAD]  f32   per-core partial sum of M @ y_ins
                                    (resident across the arbitrary N axis)
    """
    i = pl.program_id(1)  # position along the N (reduction) axis for this core

    @pl.when(i == 0)
    def _init():
        ybag_ref[...] = jnp.zeros_like(ybag_ref)

    # ---- instance path (pool folded into w1_eff) ----
    x = x_ref[...].astype(jnp.float32)                                   # [T, C*HW]
    feat = jnp.dot(x, w1_ref[...],
                   preferred_element_type=jnp.float32) + b1_ref[...]     # [T, 512]
    logits = jnp.dot(feat, w2_ref[...],
                     preferred_element_type=jnp.float32) + b2_ref[...]   # [T, C_PAD]
    # F.softmax(y_ins, dim=1); padded classes have -1e30 bias -> prob 0
    mx = jnp.max(logits, axis=-1, keepdims=True)
    e = jnp.exp(logits - mx)
    p = e * pl.reciprocal(jnp.sum(e, axis=-1, keepdims=True), approx=False)
    yins_ref[...] = p

    # ---- bag aggregation: partial mean via membership matmul, accumulated
    #      directly into the resident output block ----
    ybag_ref[...] += jnp.dot(m_ref[...], p, preferred_element_type=jnp.float32)


@functools.partial(jax.jit, static_argnames=("len_tuple", "tile_n"))
def _output_agg_impl(x, w1, b1, w2, b2, *, len_tuple, tile_n):
    N, C, H, W = x.shape
    hidden, num_class = w2.shape
    HW = H * W
    K = C * HW
    B = len(len_tuple)

    # --- padding / tiling geometry (all static) ---
    c_pad = _round_up(num_class, 128)                 # lane-dense class axis
    b_pad = max(8, _round_up(B, 8))                   # sublane-dense bag axis
    tile_n = _round_up(min(tile_n, _round_up(N, 8)), 8)
    n_tiles = (N + tile_n - 1) // tile_n
    n_split = 2 if n_tiles >= 2 else 1                # 2 TCs on v7x; serial elsewhere
    tiles_per_split = (n_tiles + n_split - 1) // n_split
    n_pad = n_split * tiles_per_split * tile_n

    # --- inputs: lane-dense 2-D bf16 x (single cast+tail-pad pass under jit) ---
    x2d = jnp.pad(x.reshape(N, K).astype(jnp.bfloat16), ((0, n_pad - N), (0, 0)))

    # fold global-average-pool into the first projection:
    #   feat = mean_s(x[:, c, s]) @ w1  ==  x2d @ w1_eff,  w1_eff[c*HW+s, h] = w1[c, h]/HW
    w1_eff = jnp.repeat(w1.astype(jnp.float32), HW, axis=0) / float(HW)
    b1_f = b1.astype(jnp.float32)

    w2_p = jnp.pad(w2.astype(jnp.float32), ((0, 0), (0, c_pad - num_class)))
    b2_p = jnp.concatenate(
        [b2.astype(jnp.float32),
         jnp.full((1, c_pad - num_class), _NEG_BIG, jnp.float32)], axis=1)

    # membership/mean matrix (static constant): M[b, i] = 1/len[b] for i in bag b.
    # Empty bags keep an all-zero row (uniform softmax downstream instead of
    # PyTorch's NaN mean-of-empty-slice) -- intentional guard.
    lens = np.asarray(len_tuple, dtype=np.int64)
    offs = np.concatenate([[0], np.cumsum(lens)[:-1]]) if B > 0 else np.zeros((0,), np.int64)
    mm = np.zeros((b_pad, n_pad), np.float32)
    for b, (o, L) in enumerate(zip(offs, lens)):
        if L > 0:
            mm[b, int(o):int(o) + int(L)] = 1.0 / float(L)
    mmat = jnp.asarray(mm)

    T = tiles_per_split  # captured statically by the index maps below

    y_ins_pad, y_bag_partial = pl.pallas_call(
        _fused_kernel,
        out_shape=(jax.ShapeDtypeStruct((n_pad, c_pad), jnp.float32),
                   jax.ShapeDtypeStruct((n_split * b_pad, c_pad), jnp.float32)),
        grid_spec=pltpu.PrefetchScalarGridSpec(
            num_scalar_prefetch=0,
            grid=(n_split, tiles_per_split),
            in_specs=[
                pl.BlockSpec((tile_n, K), lambda c, i, T=T: (c * T + i, 0)),    # x tile (pipelined)
                pl.BlockSpec((K, hidden), lambda c, i: (0, 0)),                 # w1_eff resident
                pl.BlockSpec((1, hidden), lambda c, i: (0, 0)),                 # b1 resident
                pl.BlockSpec((hidden, c_pad), lambda c, i: (0, 0)),             # w2 resident
                pl.BlockSpec((1, c_pad), lambda c, i: (0, 0)),                  # b2 resident
                pl.BlockSpec((b_pad, tile_n), lambda c, i, T=T: (0, c * T + i)),  # membership tile
            ],
            out_specs=[
                pl.BlockSpec((tile_n, c_pad), lambda c, i, T=T: (c * T + i, 0)),  # y_ins per tile
                pl.BlockSpec((b_pad, c_pad), lambda c, i: (c, 0)),                # per-core bag sum
            ],
        ),
        compiler_params=pltpu.CompilerParams(
            # axis 0: independent halves of N (sharded across TCs on v7x);
            # axis 1: carries the resident bag accumulator -> reduction axis.
            dimension_semantics=("parallel", "arbitrary"),
        ),
    )(x2d, w1_eff, b1_f, w2_p, b2_p, mmat)

    # tiny finalize (fused into the same jit): cross-core partial sum, strip
    # padding, per-bag softmax over the class axis (== F.softmax(mean, dim=0)
    # on each 1-D [num_class] bag vector).
    bag_sum = y_bag_partial.reshape(n_split, b_pad, c_pad).sum(axis=0)
    y_bags = jax.nn.softmax(bag_sum[:B, :num_class], axis=-1)
    return {"bag": y_bags, "ins": y_ins_pad[:N, :num_class]}


def output_agg_forward(x, w1, b1, w2, b2, len_list, *, tile_n=512):
    # TODO(synk): resnet18 pretrained backbone replaced by synthetic
    # pool + Linear(C_in, 512) feature extractor (conv weights cannot be
    # loaded in a self-contained script).
    return _output_agg_impl(x, w1, b1, w2, b2,
                            len_tuple=tuple(int(l) for l in len_list),
                            tile_n=int(tile_n))


if __name__ == "__main__":
    key = jax.random.PRNGKey(0)
    k1, k2, k3, k4, k5 = jax.random.split(key, 5)

    # small shapes: 8 instances of 3x16x16 images, grouped into bags of [3, 5]
    N, C, H, W = 8, 3, 16, 16
    hidden = 512
    num_class = 4
    len_list = [3, 5]

    x = jax.random.normal(k1, (N, C, H, W), jnp.float32)
    w1 = jax.random.normal(k2, (C, hidden), jnp.float32) * 0.1            # synthetic backbone proj
    b1 = jax.random.normal(k3, (1, hidden), jnp.float32) * 0.01
    w2 = jax.random.normal(k4, (hidden, num_class), jnp.float32) * 0.05   # classifier weight
    b2 = jax.random.normal(k5, (1, num_class), jnp.float32) * 0.01        # classifier bias

    out = output_agg_forward(x, w1, b1, w2, b2, len_list)
    jax.block_until_ready(out)

    # pure-JAX reference for the same synthetic forward. The kernel streams x
    # as bf16 for HBM bandwidth, so the reference sees the same bf16-rounded
    # input (weights and all math stay f32).
    xr = x.astype(jnp.bfloat16).astype(jnp.float32)
    pooled = xr.reshape(N, C, H * W).mean(-1)
    logits = (pooled @ w1 + b1) @ w2 + b2
    y_ins_ref = jax.nn.softmax(logits, axis=1)
    bags, s = [], 0
    for L in len_list:
        bags.append(jax.nn.softmax(y_ins_ref[s:s + L].mean(0)))
        s += L
    y_bags_ref = jnp.stack(bags)

    assert out["ins"].shape == (N, num_class)
    assert out["bag"].shape == (len(len_list), num_class)
    assert np.allclose(np.asarray(out["ins"]), np.asarray(y_ins_ref), atol=1e-5)
    assert np.allclose(np.asarray(out["bag"]), np.asarray(y_bags_ref), atol=1e-5)
    print("KERNEL_OK")
</pallas_src>

<mosaic_0001>
module attributes {stable_mosaic.version = 11 : i64} {
  func.func @_fused_kernel(%arg0: i32, %arg1: i32, %arg2: memref<8x768xbf16, #tpu.memory_space<vmem>>, %arg3: memref<768x512xf32, #tpu.memory_space<vmem>>, %arg4: memref<1x512xf32, #tpu.memory_space<vmem>>, %arg5: memref<512x128xf32, #tpu.memory_space<vmem>>, %arg6: memref<1x128xf32, #tpu.memory_space<vmem>>, %arg7: memref<8x8xf32, #tpu.memory_space<vmem>>, %arg8: memref<8x128xf32, #tpu.memory_space<vmem>>, %arg9: memref<8x128xf32, #tpu.memory_space<vmem>>) attributes {dimension_semantics = [#tpu.dimension_semantics<parallel>, #tpu.dimension_semantics<arbitrary>], iteration_bounds = array<i64: 1, 1>, scalar_prefetch = 0 : i64, scratch_operands = 0 : i64, tpu.core_type = #tpu.core_type<tc>, window_params = [{transform_indices = @transform_0, window_bounds = array<i64: 8, 768>}, {pipeline_mode = #tpu.pipeline_mode<synchronous>, transform_indices = @transform_1, window_bounds = array<i64: 768, 512>}, {pipeline_mode = #tpu.pipeline_mode<synchronous>, transform_indices = @transform_2, window_bounds = array<i64: 1, 512>}, {pipeline_mode = #tpu.pipeline_mode<synchronous>, transform_indices = @transform_3, window_bounds = array<i64: 512, 128>}, {pipeline_mode = #tpu.pipeline_mode<synchronous>, transform_indices = @transform_4, window_bounds = array<i64: 1, 128>}, {transform_indices = @transform_5, window_bounds = array<i64: 8, 8>}, {transform_indices = @transform_6, window_bounds = array<i64: 8, 128>}, {transform_indices = @transform_7, window_bounds = array<i64: 8, 128>}]} {
    %c0_i32 = arith.constant 0 : i32
    %0 = arith.cmpi eq, %arg1, %c0_i32 : i32
    %1 = arith.extui %0 : i1 to i32
    %c0_i32_0 = arith.constant 0 : i32
    %2 = arith.cmpi ne, %1, %c0_i32_0 : i32
    scf.if %2 {
      %cst_22 = arith.constant 0.000000e+00 : f32
      %31 = vector.broadcast %cst_22 : f32 to vector<8x128xf32>
      %c0_23 = arith.constant 0 : index
      %c0_24 = arith.constant 0 : index
      %32 = vector.load %arg9[%c0_23, %c0_24] : memref<8x128xf32, #tpu.memory_space<vmem>>, vector<8x128xf32>
      tpu.vector_store %arg9[%c0_23, %c0_24], %31 {strides = array<i32>} : memref<8x128xf32, #tpu.memory_space<vmem>>, vector<8x128xf32>,
    } else {
    }
    %c0 = arith.constant 0 : index
    %c0_1 = arith.constant 0 : index
    %3 = vector.load %arg2[%c0, %c0_1] : memref<8x768xbf16, #tpu.memory_space<vmem>>, vector<8x768xbf16>
    %4 = arith.extf %3 : vector<8x768xbf16> to vector<8x768xf32>
    %c0_2 = arith.constant 0 : index
    %c0_3 = arith.constant 0 : index
    %5 = vector.load %arg3[%c0_2, %c0_3] : memref<768x512xf32, #tpu.memory_space<vmem>>, vector<768x512xf32>
    %cst = arith.constant dense<0.000000e+00> : vector<8x512xf32>
    %6 = tpu.matmul %4, %5, %cst {dimension_numbers = #tpu.dot_dimension_numbers<[1], [0], [0], [1], [0, 0, 1, 1], [], []>} : vector<8x768xf32>, vector<768x512xf32>, vector<8x512xf32> -> vector<8x512xf32>
    %c0_4 = arith.constant 0 : index
    %c0_5 = arith.constant 0 : index
    %7 = vector.load %arg4[%c0_4, %c0_5] : memref<1x512xf32, #tpu.memory_space<vmem>>, vector<1x512xf32>
    %8 = vector.broadcast %7 : vector<1x512xf32> to vector<8x512xf32>
    %9 = arith.addf %6, %8 : vector<8x512xf32>
    %c0_6 = arith.constant 0 : index
    %c0_7 = arith.constant 0 : index
    %10 = vector.load %arg5[%c0_6, %c0_7] : memref<512x128xf32, #tpu.memory_space<vmem>>, vector<512x128xf32>
    %cst_8 = arith.constant dense<0.000000e+00> : vector<8x128xf32>
    %11 = tpu.matmul %9, %10, %cst_8 {dimension_numbers = #tpu.dot_dimension_numbers<[1], [0], [0], [1], [0, 0, 1, 1], [], []>} : vector<8x512xf32>, vector<512x128xf32>, vector<8x128xf32> -> vector<8x128xf32>
    %c0_9 = arith.constant 0 : index
    %c0_10 = arith.constant 0 : index
    %12 = vector.load %arg6[%c0_9, %c0_10] : memref<1x128xf32, #tpu.memory_space<vmem>>, vector<1x128xf32>
    %13 = vector.broadcast %12 : vector<1x128xf32> to vector<8x128xf32>
    %14 = arith.addf %11, %13 : vector<8x128xf32>
    %cst_11 = arith.constant dense<0xFF800000> : vector<8xf32>
    %15 = vector.multi_reduction <maximumf>, %14, %cst_11 [1] : vector<8x128xf32> to vector<8xf32>
    %16 = vector.shape_cast %15 : vector<8xf32> to vector<8x1xf32>
    %17 = vector.broadcast %16 : vector<8x1xf32> to vector<8x128xf32>
    %18 = arith.subf %14, %17 : vector<8x128xf32>
    %19 = math.exp %18 : vector<8x128xf32>
    %cst_12 = arith.constant dense<0.000000e+00> : vector<8xf32>
    %20 = vector.multi_reduction <add>, %19, %cst_12 [1] : vector<8x128xf32> to vector<8xf32>
    %21 = vector.shape_cast %20 : vector<8xf32> to vector<8x1xf32>
    %22 = tpu.reciprocal %21 : vector<8x1xf32> -> vector<8x1xf32>
    %23 = vector.broadcast %22 : vector<8x1xf32> to vector<8x128xf32>
    %24 = arith.mulf %19, %23 : vector<8x128xf32>
    %c0_13 = arith.constant 0 : index
    %c0_14 = arith.constant 0 : index
    %25 = vector.load %arg8[%c0_13, %c0_14] : memref<8x128xf32, #tpu.memory_space<vmem>>, vector<8x128xf32>
    tpu.vector_store %arg8[%c0_13, %c0_14], %24 {strides = array<i32>} : memref<8x128xf32, #tpu.memory_space<vmem>>, vector<8x128xf32>,
    %c0_15 = arith.constant 0 : index
    %c0_16 = arith.constant 0 : index
    %26 = vector.load %arg9[%c0_15, %c0_16] : memref<8x128xf32, #tpu.memory_space<vmem>>, vector<8x128xf32>
    %c0_17 = arith.constant 0 : index
    %c0_18 = arith.constant 0 : index
    %27 = vector.load %arg7[%c0_17, %c0_18] : memref<8x8xf32, #tpu.memory_space<vmem>>, vector<8x8xf32>
    %cst_19 = arith.constant dense<0.000000e+00> : vector<8x128xf32>
    %28 = tpu.matmul %27, %24, %cst_19 {dimension_numbers = #tpu.dot_dimension_numbers<[1], [0], [0], [1], [0, 0, 1, 1], [], []>} : vector<8x8xf32>, vector<8x128xf32>, vector<8x128xf32> -> vector<8x128xf32>
    %29 = arith.addf %26, %28 : vector<8x128xf32>
    %c0_20 = arith.constant 0 : index
    %c0_21 = arith.constant 0 : index
    %30 = vector.load %arg9[%c0_20, %c0_21] : memref<8x128xf32, #tpu.memory_space<vmem>>, vector<8x128xf32>
    tpu.vector_store %arg9[%c0_20, %c0_21], %29 {strides = array<i32>} : memref<8x128xf32, #tpu.memory_space<vmem>>, vector<8x128xf32>,
    return
  }
  func.func @transform_0(%arg0: i32, %arg1: i32) -> (i32, i32) {
    %c1_i32 = arith.constant 1 : i32
    %0 = arith.muli %arg0, %c1_i32 : i32
    %1 = arith.addi %0, %arg1 : i32
    %c0_i32 = arith.constant 0 : i32
    %c0_i32_0 = arith.constant 0 : i32
    return %1, %c0_i32 : i32, i32
  }
  func.func @transform_1(%arg0: i32, %arg1: i32) -> (i32, i32) {
    %c0_i32 = arith.constant 0 : i32
    %c0_i32_0 = arith.constant 0 : i32
    %c0_i32_1 = arith.constant 0 : i32
    return %c0_i32, %c0_i32_0 : i32, i32
  }
  func.func @transform_2(%arg0: i32, %arg1: i32) -> (i32, i32) {
    %c0_i32 = arith.constant 0 : i32
    %c0_i32_0 = arith.constant 0 : i32
    %c0_i32_1 = arith.constant 0 : i32
    return %c0_i32, %c0_i32_0 : i32, i32
  }
  func.func @transform_3(%arg0: i32, %arg1: i32) -> (i32, i32) {
    %c0_i32 = arith.constant 0 : i32
    %c0_i32_0 = arith.constant 0 : i32
    %c0_i32_1 = arith.constant 0 : i32
    return %c0_i32, %c0_i32_0 : i32, i32
  }
  func.func @transform_4(%arg0: i32, %arg1: i32) -> (i32, i32) {
    %c0_i32 = arith.constant 0 : i32
    %c0_i32_0 = arith.constant 0 : i32
    %c0_i32_1 = arith.constant 0 : i32
    return %c0_i32, %c0_i32_0 : i32, i32
  }
  func.func @transform_5(%arg0: i32, %arg1: i32) -> (i32, i32) {
    %c1_i32 = arith.constant 1 : i32
    %0 = arith.muli %arg0, %c1_i32 : i32
    %1 = arith.addi %0, %arg1 : i32
    %c0_i32 = arith.constant 0 : i32
    %c0_i32_0 = arith.constant 0 : i32
    return %c0_i32, %1 : i32, i32
  }
  func.func @transform_6(%arg0: i32, %arg1: i32) -> (i32, i32) {
    %c1_i32 = arith.constant 1 : i32
    %0 = arith.muli %arg0, %c1_i32 : i32
    %1 = arith.addi %0, %arg1 : i32
    %c0_i32 = arith.constant 0 : i32
    %c0_i32_0 = arith.constant 0 : i32
    return %1, %c0_i32 : i32, i32
  }
  func.func @transform_7(%arg0: i32, %arg1: i32) -> (i32, i32) {
    %c0_i32 = arith.constant 0 : i32
    %c0_i32_0 = arith.constant 0 : i32
    return %arg0, %c0_i32 : i32, i32
  }
}

</mosaic_0001>

<bundles_post_ra>
// kernel: _output_agg_impl.1
= control target key start
LH: loop header
LB: loop body
LE: loop exit
PB: predicated region body
PF: predicated region fallthrough
CT: control target
= control target key end

     0   :  { %vm1134_vm4 = vcmask 64512   ;;  %s2656_s1 = inlined_call_operand.vmem [shape: f32[768,512], index: 1, kind: input, shape index: {}]   ;;  %s2657_s0 = inlined_call_operand.vmem [shape: bf16[8,768], index: 0, kind: input, shape index: {}]   ;;  %s2658_s3 = inlined_call_operand.vmem [shape: f32[512,128], index: 3, kind: input, shape index: {}]   ;;  %s2659_s2 = inlined_call_operand.vmem [shape: f32[1,512], index: 2, kind: input, shape index: {}]   ;;  %s2660_s4 = inlined_call_operand.vmem [shape: f32[1,128], index: 4, kind: input, shape index: {}]   ;;  %s2661_s5 = inlined_call_operand.vmem [shape: f32[8,8], index: 5, kind: input, shape index: {}]   ;;  %s2662_s6 = inlined_call_operand.vmem [shape: f32[8,128], index: 6, kind: output, shape index: {0}]   ;;  %s2663_s7 = inlined_call_operand.vmem [shape: f32[8,128], index: 7, kind: output, shape index: {1}]  }
   0x1   :  { %v147_v0 = vld [vmem:[%s2656_s1 + $0x1e0] sm:$0xff]  ;;  %v148_v63 = vld [vmem:[%s2656_s1 + $0x1e8] sm:$0xff] }
   0x2   :  { %v275_v1 = vld [vmem:[%s2656_s1 + $0x5e0] sm:$0xff]  ;;  %481 = vmatpush.msra.mxu0 %v147_v0 }
   0x3   :  { %v143_v2 = vld [vmem:[%s2656_s1 + $0x1c0] sm:$0xff]  ;;  %521 = vmatpush.msra.mxu2 %v275_v1 }
   0x4   :  { %v211_v3 = vld [vmem:[%s2656_s1 + $0x3e0] sm:$0xff]  ;;  %482 = vmatpush.msra.mxu0 %v143_v2 }
   0x5   :  { %v271_v4 = vld [vmem:[%s2656_s1 + $0x5c0] sm:$0xff]  ;;  %501 = vmatpush.msra.mxu1 %v211_v3 }
   0x6   :  { %v339_v5 = vld [vmem:[%s2656_s1 + $0x7e0] sm:$0xff]  ;;  %522 = vmatpush.msra.mxu2 %v271_v4  ;;  %v144_v4 = vld [vmem:[%s2656_s1 + $0x1c8] sm:$0xff] }
   0x7   :  { %541 = vmatpush.msra.mxu3 %v339_v5  ;;  %v139_v6 = vld [vmem:[%s2656_s1 + $0x1a0] sm:$0xff]  ;;  %v212_v5 = vld [vmem:[%s2656_s1 + $0x3e8] sm:$0xff] }
   0x8   :  { %v207_v7 = vld [vmem:[%s2656_s1 + $0x3c0] sm:$0xff]  ;;  %483 = vmatpush.msra.mxu0 %v139_v6 }
   0x9   :  { %v267_v8 = vld [vmem:[%s2656_s1 + $0x5a0] sm:$0xff]  ;;  %502 = vmatpush.msra.mxu1 %v207_v7 }
   0xa   :  { %v335_v9 = vld [vmem:[%s2656_s1 + $0x7c0] sm:$0xff]  ;;  %523 = vmatpush.msra.mxu2 %v267_v8  ;;  %v140_v8 = vld [vmem:[%s2656_s1 + $0x1a8] sm:$0xff] }
   0xb   :  { %v203_v10 = vld [vmem:[%s2656_s1 + $0x3a0] sm:$0xff]  ;;  %542 = vmatpush.msra.mxu3 %v335_v9  ;;  %v208_v9 = vld [vmem:[%s2656_s1 + $0x3c8] sm:$0xff] }
   0xc   :  { %v135_v11 = vld [vmem:[%s2656_s1 + $0x180] sm:$0xff]  ;;  %503 = vmatpush.msra.mxu1 %v203_v10 }
   0xd   :  { %v263_v12 = vld [vmem:[%s2656_s1 + $0x580] sm:$0xff]  ;;  %484 = vmatpush.msra.mxu0 %v135_v11 }
   0xe   :  { %v331_v13 = vld [vmem:[%s2656_s1 + $0x7a0] sm:$0xff]  ;;  %524 = vmatpush.msra.mxu2 %v263_v12  ;;  %v136_v12 = vld [vmem:[%s2656_s1 + $0x188] sm:$0xff] }
   0xf   :  { %v199_v14 = vld [vmem:[%s2656_s1 + $0x380] sm:$0xff]  ;;  %543 = vmatpush.msra.mxu3 %v331_v13  ;;  %v204_v13 = vld [vmem:[%s2656_s1 + $0x3a8] sm:$0xff] }
  0x10   :  { %v327_v15 = vld [vmem:[%s2656_s1 + $0x780] sm:$0xff]  ;;  %504 = vmatpush.msra.mxu1 %v199_v14 }
  0x11   :  { %v131_v16 = vld [vmem:[%s2656_s1 + $0x160] sm:$0xff]  ;;  %544 = vmatpush.msra.mxu3 %v327_v15 }
  0x12   :  { %v259_v17 = vld [vmem:[%s2656_s1 + $0x560] sm:$0xff]  ;;  %485 = vmatpush.msra.mxu0 %v131_v16  ;;  %v132_v16 = vld [vmem:[%s2656_s1 + $0x168] sm:$0xff] }
  0x13   :  { %v195_v18 = vld [vmem:[%s2656_s1 + $0x360] sm:$0xff]  ;;  %525 = vmatpush.msra.mxu2 %v259_v17  ;;  %v200_v17 = vld [vmem:[%s2656_s1 + $0x388] sm:$0xff] }
  0x14   :  { %v323_v19 = vld [vmem:[%s2656_s1 + $0x760] sm:$0xff]  ;;  %505 = vmatpush.msra.mxu1 %v195_v18 }
  0x15   :  { %v127_v20 = vld [vmem:[%s2656_s1 + $0x140] sm:$0xff]  ;;  %545 = vmatpush.msra.mxu3 %v323_v19 }
  0x16   :  { %v255_v21 = vld [vmem:[%s2656_s1 + $0x540] sm:$0xff]  ;;  %486 = vmatpush.msra.mxu0 %v127_v20  ;;  %v128_v20 = vld [vmem:[%s2656_s1 + $0x148] sm:$0xff] }
  0x17   :  { %v191_v22 = vld [vmem:[%s2656_s1 + $0x340] sm:$0xff]  ;;  %526 = vmatpush.msra.mxu2 %v255_v21  ;;  %v196_v21 = vld [vmem:[%s2656_s1 + $0x368] sm:$0xff] }
  0x18   :  { %v319_v23 = vld [vmem:[%s2656_s1 + $0x740] sm:$0xff]  ;;  %506 = vmatpush.msra.mxu1 %v191_v22 }
  0x19   :  { %v123_v24 = vld [vmem:[%s2656_s1 + $0x120] sm:$0xff]  ;;  %546 = vmatpush.msra.mxu3 %v319_v23 }
  0x1a   :  { %v251_v25 = vld [vmem:[%s2656_s1 + $0x520] sm:$0xff]  ;;  %487 = vmatpush.msra.mxu0 %v123_v24  ;;  %v124_v24 = vld [vmem:[%s2656_s1 + $0x128] sm:$0xff] }
  0x1b   :  { %v187_v26 = vld [vmem:[%s2656_s1 + $0x320] sm:$0xff]  ;;  %527 = vmatpush.msra.mxu2 %v251_v25  ;;  %v192_v25 = vld [vmem:[%s2656_s1 + $0x348] sm:$0xff] }
  0x1c   :  { %v315_v27 = vld [vmem:[%s2656_s1 + $0x720] sm:$0xff]  ;;  %507 = vmatpush.msra.mxu1 %v187_v26 }
  0x1d   :  { %v119_v28 = vld [vmem:[%s2656_s1 + $0x100] sm:$0xff]  ;;  %547 = vmatpush.msra.mxu3 %v315_v27 }
  0x1e   :  { %v247_v29 = vld [vmem:[%s2656_s1 + $0x500] sm:$0xff]  ;;  %488 = vmatpush.msra.mxu0 %v119_v28  ;;  %v120_v28 = vld [vmem:[%s2656_s1 + $0x108] sm:$0xff] }
  0x1f   :  { %v183_v30 = vld [vmem:[%s2656_s1 + $0x300] sm:$0xff]  ;;  %528 = vmatpush.msra.mxu2 %v247_v29  ;;  %v188_v29 = vld [vmem:[%s2656_s1 + $0x328] sm:$0xff] }
  0x20   :  { %v311_v31 = vld [vmem:[%s2656_s1 + $0x700] sm:$0xff]  ;;  %508 = vmatpush.msra.mxu1 %v183_v30 }
  0x21   :  { %v115_v32 = vld [vmem:[%s2656_s1 + $0xe0] sm:$0xff]  ;;  %548 = vmatpush.msra.mxu3 %v311_v31 }
  0x22   :  { %v243_v33 = vld [vmem:[%s2656_s1 + $0x4e0] sm:$0xff]  ;;  %489 = vmatpush.msra.mxu0 %v115_v32  ;;  %v116_v32 = vld [vmem:[%s2656_s1 + $0xe8] sm:$0xff] }
  0x23   :  { %v179_v34 = vld [vmem:[%s2656_s1 + $0x2e0] sm:$0xff]  ;;  %529 = vmatpush.msra.mxu2 %v243_v33  ;;  %v184_v33 = vld [vmem:[%s2656_s1 + $0x308] sm:$0xff] }
  0x24   :  { %v307_v35 = vld [vmem:[%s2656_s1 + $0x6e0] sm:$0xff]  ;;  %509 = vmatpush.msra.mxu1 %v179_v34 }
  0x25   :  { %v111_v36 = vld [vmem:[%s2656_s1 + $0xc0] sm:$0xff]  ;;  %549 = vmatpush.msra.mxu3 %v307_v35 }
  0x26   :  { %v239_v37 = vld [vmem:[%s2656_s1 + $0x4c0] sm:$0xff]  ;;  %490 = vmatpush.msra.mxu0 %v111_v36  ;;  %v112_v36 = vld [vmem:[%s2656_s1 + $0xc8] sm:$0xff] }
  0x27   :  { %v175_v38 = vld [vmem:[%s2656_s1 + $0x2c0] sm:$0xff]  ;;  %530 = vmatpush.msra.mxu2 %v239_v37  ;;  %v180_v37 = vld [vmem:[%s2656_s1 + $0x2e8] sm:$0xff] }
  0x28   :  { %v303_v39 = vld [vmem:[%s2656_s1 + $0x6c0] sm:$0xff]  ;;  %510 = vmatpush.msra.mxu1 %v175_v38 }
  0x29   :  { %v107_v40 = vld [vmem:[%s2656_s1 + $0xa0] sm:$0xff]  ;;  %550 = vmatpush.msra.mxu3 %v303_v39 }
  0x2a   :  { %v235_v41 = vld [vmem:[%s2656_s1 + $0x4a0] sm:$0xff]  ;;  %491 = vmatpush.msra.mxu0 %v107_v40  ;;  %v108_v40 = vld [vmem:[%s2656_s1 + $0xa8] sm:$0xff] }
  0x2b   :  { %v171_v42 = vld [vmem:[%s2656_s1 + $0x2a0] sm:$0xff]  ;;  %531 = vmatpush.msra.mxu2 %v235_v41  ;;  %v176_v41 = vld [vmem:[%s2656_s1 + $0x2c8] sm:$0xff] }
  0x2c   :  { %v299_v43 = vld [vmem:[%s2656_s1 + $0x6a0] sm:$0xff]  ;;  %511 = vmatpush.msra.mxu1 %v171_v42 }
  0x2d   :  { %v103_v44 = vld [vmem:[%s2656_s1 + $0x80] sm:$0xff]  ;;  %551 = vmatpush.msra.mxu3 %v299_v43 }
  0x2e   :  { %v231_v45 = vld [vmem:[%s2656_s1 + $0x480] sm:$0xff]  ;;  %492 = vmatpush.msra.mxu0 %v103_v44  ;;  %v104_v44 = vld [vmem:[%s2656_s1 + $0x88] sm:$0xff] }
  0x2f   :  { %v167_v46 = vld [vmem:[%s2656_s1 + $0x280] sm:$0xff]  ;;  %532 = vmatpush.msra.mxu2 %v231_v45  ;;  %v172_v45 = vld [vmem:[%s2656_s1 + $0x2a8] sm:$0xff] }
  0x30   :  { %v295_v47 = vld [vmem:[%s2656_s1 + $0x680] sm:$0xff]  ;;  %512 = vmatpush.msra.mxu1 %v167_v46 }
  0x31   :  { %v99_v48 = vld [vmem:[%s2656_s1 + $0x60] sm:$0xff]  ;;  %552 = vmatpush.msra.mxu3 %v295_v47 }
  0x32   :  { %v227_v49 = vld [vmem:[%s2656_s1 + $0x460] sm:$0xff]  ;;  %493 = vmatpush.msra.mxu0 %v99_v48  ;;  %v100_v48 = vld [vmem:[%s2656_s1 + $0x68] sm:$0xff] }
  0x33   :  { %v163_v50 = vld [vmem:[%s2656_s1 + $0x260] sm:$0xff]  ;;  %533 = vmatpush.msra.mxu2 %v227_v49  ;;  %v168_v49 = vld [vmem:[%s2656_s1 + $0x288] sm:$0xff] }
  0x34   :  { %v291_v51 = vld [vmem:[%s2656_s1 + $0x660] sm:$0xff]  ;;  %513 = vmatpush.msra.mxu1 %v163_v50 }
  0x35   :  { %v95_v52 = vld [vmem:[%s2656_s1 + $0x40] sm:$0xff]  ;;  %553 = vmatpush.msra.mxu3 %v291_v51 }
  0x36   :  { %v223_v53 = vld [vmem:[%s2656_s1 + $0x440] sm:$0xff]  ;;  %494 = vmatpush.msra.mxu0 %v95_v52  ;;  %v96_v52 = vld [vmem:[%s2656_s1 + $0x48] sm:$0xff] }
  0x37   :  { %v159_v54 = vld [vmem:[%s2656_s1 + $0x240] sm:$0xff]  ;;  %534 = vmatpush.msra.mxu2 %v223_v53  ;;  %v164_v53 = vld [vmem:[%s2656_s1 + $0x268] sm:$0xff] }
  0x38   :  { %v287_v55 = vld [vmem:[%s2656_s1 + $0x640] sm:$0xff]  ;;  %514 = vmatpush.msra.mxu1 %v159_v54 }
  0x39   :  { %v91_v56 = vld [vmem:[%s2656_s1 + $0x20] sm:$0xff]  ;;  %554 = vmatpush.msra.mxu3 %v287_v55 }
  0x3a   :  { %v219_v57 = vld [vmem:[%s2656_s1 + $0x420] sm:$0xff]  ;;  %495 = vmatpush.msra.mxu0 %v91_v56 }
  0x3b   :  { %v155_v58 = vld [vmem:[%s2656_s1 + $0x220] sm:$0xff]  ;;  %535 = vmatpush.msra.mxu2 %v219_v57  ;;  %v79_v57 = vld [vmem:[%s2657_s0 + $0x8] sm:$0xff] }
  0x3c   :  { %v283_v59 = vld [vmem:[%s2656_s1 + $0x620] sm:$0xff]  ;;  %515 = vmatpush.msra.mxu1 %v155_v58  ;;  %v92_v58 = vld [vmem:[%s2656_s1 + $0x28] sm:$0xff] }
  0x3d   :  { %v87_v60 = vld [vmem:[%s2656_s1] sm:$0xff]  ;;  %555 = vmatpush.msra.mxu3 %v283_v59  ;;  %v160_v59 = vld [vmem:[%s2656_s1 + $0x248] sm:$0xff] }
  0x3e   :  { %v215_v61 = vld [vmem:[%s2656_s1 + $0x400] sm:$0xff]  ;;  %496 = vmatpush.msra.mxu0 %v87_v60 }
  0x3f   :  { %v403_v62 = vld [vmem:[%s2656_s1 + $0x9e0] sm:$0xff]  ;;  %536 = vmatpush.msra.mxu2 %v215_v61 }
  0x40   :  { %v151_v0 = vld [vmem:[%s2656_s1 + $0x200] sm:$0xff]  ;;  %561 = vmatpush.msrb.mxu0 %v403_v62  ;;  %v88_v62 = vld [vmem:[%s2656_s1 + $0x8] sm:$0xff] }
  0x41   :  { %v279_v1 = vld [vmem:[%s2656_s1 + $0x600] sm:$0xff]  ;;  %601 = vmatpush.msrb.mxu2 %v148_v63  ;;  %516 = vmatpush.msra.mxu1 %v151_v0  ;;  %v156_v63 = vld [vmem:[%s2656_s1 + $0x228] sm:$0xff] }
  0x42   :  { %v399_v2 = vld [vmem:[%s2656_s1 + $0x9c0] sm:$0xff]  ;;  %556 = vmatpush.msra.mxu3 %v279_v1  ;;  %v1632_v1 = vunpack.c.l.bf16 %v79_v57 }
  0x43   :  { %v467_v3 = vld [vmem:[%s2656_s1 + $0xbe0] sm:$0xff]  ;;  %562 = vmatpush.msrb.mxu0 %v399_v2  ;;  %602 = vmatpush.msrb.mxu2 %v144_v4  ;;  %v276_v2 = vld [vmem:[%s2656_s1 + $0x5e8] sm:$0xff] }
  0x44   :  { %v395_v6 = vld [vmem:[%s2656_s1 + $0x9a0] sm:$0xff]  ;;  %581 = vmatpush.msrb.mxu1 %v467_v3  ;;  %621 = vmatpush.msrb.mxu3 %v212_v5  ;;  %v404_v3 = vld [vmem:[%s2656_s1 + $0x9e8] sm:$0xff] }
  0x45   :  { %v463_v7 = vld [vmem:[%s2656_s1 + $0xbc0] sm:$0xff]  ;;  %563 = vmatpush.msrb.mxu0 %v395_v6  ;;  %603 = vmatpush.msrb.mxu2 %v140_v8  ;;  %v152_v5 = vld [vmem:[%s2656_s1 + $0x208] sm:$0xff] }
  0x46   :  { %v391_v10 = vld [vmem:[%s2656_s1 + $0x980] sm:$0xff]  ;;  %582 = vmatpush.msrb.mxu1 %v463_v7  ;;  %622 = vmatpush.msrb.mxu3 %v208_v9  ;;  %v1648_v7 = vunpack.c.h.bf16 %v79_v57  ;;  %v272_v8 = vld [vmem:[%s2656_s1 + $0x5c8] sm:$0xff] }
  0x47   :  { %v459_v11 = vld [vmem:[%s2656_s1 + $0xba0] sm:$0xff]  ;;  %564 = vmatpush.msrb.mxu0 %v391_v10  ;;  %604 = vmatpush.msrb.mxu2 %v136_v12  ;;  %v340_v9 = vld [vmem:[%s2656_s1 + $0x7e8] sm:$0xff] }
  0x48   :  { %v387_v14 = vld [vmem:[%s2656_s1 + $0x960] sm:$0xff]  ;;  %583 = vmatpush.msrb.mxu1 %v459_v11  ;;  %623 = vmatpush.msrb.mxu3 %v204_v13  ;;  %v400_v10 = vld [vmem:[%s2656_s1 + $0x9c8] sm:$0xff] }
  0x49   :  { %v455_v15 = vld [vmem:[%s2656_s1 + $0xb80] sm:$0xff]  ;;  %565 = vmatpush.msrb.mxu0 %v387_v14  ;;  %605 = vmatpush.msrb.mxu2 %v132_v16  ;;  %v468_v11 = vld [vmem:[%s2656_s1 + $0xbe8] sm:$0xff] }
  0x4a   :  { %v383_v18 = vld [vmem:[%s2656_s1 + $0x940] sm:$0xff]  ;;  %584 = vmatpush.msrb.mxu1 %v455_v15  ;;  %624 = vmatpush.msrb.mxu3 %v200_v17  ;;  %v268_v12 = vld [vmem:[%s2656_s1 + $0x5a8] sm:$0xff] }
  0x4b   :  { %v451_v19 = vld [vmem:[%s2656_s1 + $0xb60] sm:$0xff]  ;;  %566 = vmatpush.msrb.mxu0 %v383_v18  ;;  %606 = vmatpush.msrb.mxu2 %v128_v20  ;;  %v336_v13 = vld [vmem:[%s2656_s1 + $0x7c8] sm:$0xff]  ;;  %v80_v18 = vld [vmem:[%s2657_s0 + $0x10] sm:$0xff] }
  0x4c   :  { %v379_v22 = vld [vmem:[%s2656_s1 + $0x920] sm:$0xff]  ;;  %585 = vmatpush.msrb.mxu1 %v451_v19  ;;  %625 = vmatpush.msrb.mxu3 %v196_v21  ;;  %v396_v14 = vld [vmem:[%s2656_s1 + $0x9a8] sm:$0xff] }
  0x4d   :  { %v447_v23 = vld [vmem:[%s2656_s1 + $0xb40] sm:$0xff]  ;;  %567 = vmatpush.msrb.mxu0 %v379_v22  ;;  %607 = vmatpush.msrb.mxu2 %v124_v24  ;;  %v464_v15 = vld [vmem:[%s2656_s1 + $0xbc8] sm:$0xff] }
  0x4e   :  { %v375_v26 = vld [vmem:[%s2656_s1 + $0x900] sm:$0xff]  ;;  %586 = vmatpush.msrb.mxu1 %v447_v23  ;;  %626 = vmatpush.msrb.mxu3 %v192_v25  ;;  %v264_v16 = vld [vmem:[%s2656_s1 + $0x588] sm:$0xff]  ;;  %v1705_v25 = vunpack.c.l.bf16 %v80_v18 }
  0x4f   :  { %v443_v27 = vld [vmem:[%s2656_s1 + $0xb20] sm:$0xff]  ;;  %568 = vmatpush.msrb.mxu0 %v375_v26  ;;  %608 = vmatpush.msrb.mxu2 %v120_v28  ;;  %v332_v17 = vld [vmem:[%s2656_s1 + $0x7a8] sm:$0xff] }
  0x50   :  { %v371_v30 = vld [vmem:[%s2656_s1 + $0x8e0] sm:$0xff]  ;;  %587 = vmatpush.msrb.mxu1 %v443_v27  ;;  %627 = vmatpush.msrb.mxu3 %v188_v29  ;;  %v392_v19 = vld [vmem:[%s2656_s1 + $0x988] sm:$0xff]  ;;  %v1716_v29 = vunpack.c.h.bf16 %v80_v18  ;;  %v341_v18 = vld [vmem:[%s2656_s1 + $0x7f0] sm:$0xff] }
  0x51   :  { %v439_v31 = vld [vmem:[%s2656_s1 + $0xb00] sm:$0xff]  ;;  %569 = vmatpush.msrb.mxu0 %v371_v30  ;;  %609 = vmatpush.msrb.mxu2 %v116_v32  ;;  %v460_v20 = vld [vmem:[%s2656_s1 + $0xba8] sm:$0xff] }
  0x52   :  { %v367_v34 = vld [vmem:[%s2656_s1 + $0x8c0] sm:$0xff]  ;;  %588 = vmatpush.msrb.mxu1 %v439_v31  ;;  %628 = vmatpush.msrb.mxu3 %v184_v33  ;;  %v260_v21 = vld [vmem:[%s2656_s1 + $0x568] sm:$0xff] }
  0x53   :  { %v435_v35 = vld [vmem:[%s2656_s1 + $0xae0] sm:$0xff]  ;;  %570 = vmatpush.msrb.mxu0 %v367_v34  ;;  %610 = vmatpush.msrb.mxu2 %v112_v36  ;;  %v328_v22 = vld [vmem:[%s2656_s1 + $0x788] sm:$0xff] }
  0x54   :  { %v363_v38 = vld [vmem:[%s2656_s1 + $0x8a0] sm:$0xff]  ;;  %589 = vmatpush.msrb.mxu1 %v435_v35  ;;  %629 = vmatpush.msrb.mxu3 %v180_v37  ;;  %v388_v23 = vld [vmem:[%s2656_s1 + $0x968] sm:$0xff] }
  0x55   :  { %v431_v39 = vld [vmem:[%s2656_s1 + $0xac0] sm:$0xff]  ;;  %571 = vmatpush.msrb.mxu0 %v363_v38  ;;  %611 = vmatpush.msrb.mxu2 %v108_v40  ;;  %v456_v24 = vld [vmem:[%s2656_s1 + $0xb88] sm:$0xff] }
  0x56   :  { %v359_v42 = vld [vmem:[%s2656_s1 + $0x880] sm:$0xff]  ;;  %590 = vmatpush.msrb.mxu1 %v431_v39  ;;  %630 = vmatpush.msrb.mxu3 %v176_v41  ;;  %v324_v26 = vld [vmem:[%s2656_s1 + $0x768] sm:$0xff] }
  0x57   :  { %v427_v43 = vld [vmem:[%s2656_s1 + $0xaa0] sm:$0xff]  ;;  %572 = vmatpush.msrb.mxu0 %v359_v42  ;;  %612 = vmatpush.msrb.mxu2 %v104_v44  ;;  %v256_v27 = vld [vmem:[%s2656_s1 + $0x548] sm:$0xff] }
  0x58   :  { %v355_v46 = vld [vmem:[%s2656_s1 + $0x860] sm:$0xff]  ;;  %591 = vmatpush.msrb.mxu1 %v427_v43  ;;  %631 = vmatpush.msrb.mxu3 %v172_v45  ;;  %v384_v28 = vld [vmem:[%s2656_s1 + $0x948] sm:$0xff] }
  0x59   :  { %v423_v47 = vld [vmem:[%s2656_s1 + $0xa80] sm:$0xff]  ;;  %573 = vmatpush.msrb.mxu0 %v355_v46  ;;  %613 = vmatpush.msrb.mxu2 %v100_v48  ;;  %v452_v30 = vld [vmem:[%s2656_s1 + $0xb68] sm:$0xff] }
  0x5a   :  { %v351_v50 = vld [vmem:[%s2656_s1 + $0x840] sm:$0xff]  ;;  %592 = vmatpush.msrb.mxu1 %v423_v47  ;;  %632 = vmatpush.msrb.mxu3 %v168_v49  ;;  %v252_v31 = vld [vmem:[%s2656_s1 + $0x528] sm:$0xff] }
  0x5b   :  { %v419_v51 = vld [vmem:[%s2656_s1 + $0xa60] sm:$0xff]  ;;  %574 = vmatpush.msrb.mxu0 %v351_v50  ;;  %614 = vmatpush.msrb.mxu2 %v96_v52  ;;  %v320_v32 = vld [vmem:[%s2656_s1 + $0x748] sm:$0xff] }
  0x5c   :  { %v347_v54 = vld [vmem:[%s2656_s1 + $0x820] sm:$0xff]  ;;  %593 = vmatpush.msrb.mxu1 %v419_v51  ;;  %633 = vmatpush.msrb.mxu3 %v164_v53  ;;  %v380_v33 = vld [vmem:[%s2656_s1 + $0x928] sm:$0xff] }
  0x5d   :  { %v415_v55 = vld [vmem:[%s2656_s1 + $0xa40] sm:$0xff]  ;;  %575 = vmatpush.msrb.mxu0 %v347_v54  ;;  %615 = vmatpush.msrb.mxu2 %v92_v58  ;;  %v448_v34 = vld [vmem:[%s2656_s1 + $0xb48] sm:$0xff] }
  0x5e   :  { %v78_v56 = vld [vmem:[%s2657_s0] sm:$0xff]  ;;  %594 = vmatpush.msrb.mxu1 %v415_v55  ;;  %634 = vmatpush.msrb.mxu3 %v160_v59  ;;  %v248_v35 = vld [vmem:[%s2656_s1 + $0x508] sm:$0xff] }
  0x5f   :  { %v343_v60 = vld [vmem:[%s2656_s1 + $0x800] sm:$0xff]  ;;  %v1630_v0 = vunpack.c.l.bf16 %v78_v56  ;;  %616 = vmatpush.msrb.mxu2 %v88_v62  ;;  %v1646_v6 = vunpack.c.h.bf16 %v78_v56  ;;  %557 = vmatmul.f32.vlgmr.msra.gmra.mxu3 %v1648_v7  ;;  %v316_v36 = vld [vmem:[%s2656_s1 + $0x728] sm:$0xff] }
  0x60   :  { %v411_v61 = vld [vmem:[%s2656_s1 + $0xa20] sm:$0xff]  ;;  %576 = vmatpush.msrb.mxu0 %v343_v60  ;;  %635 = vmatpush.msrb.mxu3 %v156_v63  ;;  %v376_v37 = vld [vmem:[%s2656_s1 + $0x908] sm:$0xff] }
  0x61   :  { %595 = vmatpush.msrb.mxu1 %v411_v61  ;;  %v407_v4 = vld [vmem:[%s2656_s1 + $0xa00] sm:$0xff]  ;;  %497 = vmatmul.f32.vlgmr.msra.gmra.mxu0 %v1630_v0  ;;  %v444_v38 = vld [vmem:[%s2656_s1 + $0xb28] sm:$0xff] }
  0x62   :  { %537 = vmatmul.f32.vlgmr.msra.gmra.mxu2 %v1632_v1  ;;  %641 = vmatpush.msra.mxu0 %v276_v2  ;;  %v244_v39 = vld [vmem:[%s2656_s1 + $0x4e8] sm:$0xff] }
  0x63   :  { %681 = vmatpush.msra.mxu2 %v404_v3  ;;  %596 = vmatpush.msrb.mxu1 %v407_v4  ;;  %v312_v40 = vld [vmem:[%s2656_s1 + $0x708] sm:$0xff] }
  0x64   :  { %636 = vmatpush.msrb.mxu3 %v152_v5  ;;  %517 = vmatmul.f32.vlgmr.msra.gmra.mxu1 %v1646_v6  ;;  %v372_v41 = vld [vmem:[%s2656_s1 + $0x8e8] sm:$0xff] }
  0x65   :  { %642 = vmatpush.msra.mxu0 %v272_v8  ;;  %661 = vmatpush.msra.mxu1 %v340_v9  ;;  %v440_v42 = vld [vmem:[%s2656_s1 + $0xb08] sm:$0xff] }
  0x66   :  { %682 = vmatpush.msra.mxu2 %v400_v10  ;;  %701 = vmatpush.msra.mxu3 %v468_v11  ;;  %v240_v43 = vld [vmem:[%s2656_s1 + $0x4c8] sm:$0xff]  ;;  %v149_v11 = vld [vmem:[%s2656_s1 + $0x1f0] sm:$0xff] }
  0x67   :  { %643 = vmatpush.msra.mxu0 %v268_v12  ;;  %662 = vmatpush.msra.mxu1 %v336_v13  ;;  %v308_v44 = vld [vmem:[%s2656_s1 + $0x6e8] sm:$0xff]  ;;  %v277_v12 = vld [vmem:[%s2656_s1 + $0x5f0] sm:$0xff] }
  0x68   :  { %683 = vmatpush.msra.mxu2 %v396_v14  ;;  %702 = vmatpush.msra.mxu3 %v464_v15  ;;  %v368_v45 = vld [vmem:[%s2656_s1 + $0x8c8] sm:$0xff]  ;;  %v145_v15 = vld [vmem:[%s2656_s1 + $0x1d0] sm:$0xff] }
  0x69   :  { %644 = vmatpush.msra.mxu0 %v264_v16  ;;  %663 = vmatpush.msra.mxu1 %v332_v17  ;;  %v436_v46 = vld [vmem:[%s2656_s1 + $0xae8] sm:$0xff]  ;;  %v213_v16 = vld [vmem:[%s2656_s1 + $0x3f0] sm:$0xff] }
  0x6a   :  { %684 = vmatpush.msra.mxu2 %v392_v19  ;;  %703 = vmatpush.msra.mxu3 %v460_v20  ;;  %v236_v47 = vld [vmem:[%s2656_s1 + $0x4a8] sm:$0xff]  ;;  %v273_v17 = vld [vmem:[%s2656_s1 + $0x5d0] sm:$0xff] }
  0x6b   :  { %645 = vmatpush.msra.mxu0 %v260_v21  ;;  %664 = vmatpush.msra.mxu1 %v328_v22  ;;  %v304_v48 = vld [vmem:[%s2656_s1 + $0x6c8] sm:$0xff]  ;;  %v141_v19 = vld [vmem:[%s2656_s1 + $0x1b0] sm:$0xff] }
  0x6c   :  { %685 = vmatpush.msra.mxu2 %v388_v23  ;;  %704 = vmatpush.msra.mxu3 %v456_v24  ;;  %v364_v49 = vld [vmem:[%s2656_s1 + $0x8a8] sm:$0xff]  ;;  %v209_v20 = vld [vmem:[%s2656_s1 + $0x3d0] sm:$0xff] }
  0x6d   :  { %577 = vmatmul.f32.vlgmr.msrb.gmra.mxu0 %v1705_v25  ;;  %665 = vmatpush.msra.mxu1 %v324_v26  ;;  %v432_v50 = vld [vmem:[%s2656_s1 + $0xac8] sm:$0xff]  ;;  %v269_v21 = vld [vmem:[%s2656_s1 + $0x5b0] sm:$0xff] }
  0x6e   :  { %646 = vmatpush.msra.mxu0 %v256_v27  ;;  %686 = vmatpush.msra.mxu2 %v384_v28  ;;  %v232_v51 = vld [vmem:[%s2656_s1 + $0x488] sm:$0xff]  ;;  %v337_v22 = vld [vmem:[%s2656_s1 + $0x7d0] sm:$0xff] }
  0x6f   :  { %705 = vmatpush.msra.mxu3 %v452_v30  ;;  %597 = vmatmul.f32.vlgmr.msrb.gmra.mxu1 %v1716_v29  ;;  %v300_v52 = vld [vmem:[%s2656_s1 + $0x6a8] sm:$0xff]  ;;  %v137_v23 = vld [vmem:[%s2656_s1 + $0x190] sm:$0xff] }
  0x70   :  { %647 = vmatpush.msra.mxu0 %v252_v31  ;;  %666 = vmatpush.msra.mxu1 %v320_v32  ;;  %v360_v53 = vld [vmem:[%s2656_s1 + $0x888] sm:$0xff]  ;;  %v205_v24 = vld [vmem:[%s2656_s1 + $0x3b0] sm:$0xff] }
  0x71   :  { %687 = vmatpush.msra.mxu2 %v380_v33  ;;  %706 = vmatpush.msra.mxu3 %v448_v34  ;;  %v428_v54 = vld [vmem:[%s2656_s1 + $0xaa8] sm:$0xff]  ;;  %v265_v26 = vld [vmem:[%s2656_s1 + $0x590] sm:$0xff] }
  0x72   :  { %648 = vmatpush.msra.mxu0 %v248_v35  ;;  %667 = vmatpush.msra.mxu1 %v316_v36  ;;  %v228_v55 = vld [vmem:[%s2656_s1 + $0x468] sm:$0xff]  ;;  %v333_v27 = vld [vmem:[%s2656_s1 + $0x7b0] sm:$0xff] }
  0x73   :  { %688 = vmatpush.msra.mxu2 %v376_v37  ;;  %707 = vmatpush.msra.mxu3 %v444_v38  ;;  %v296_v56 = vld [vmem:[%s2656_s1 + $0x688] sm:$0xff]  ;;  %v133_v28 = vld [vmem:[%s2656_s1 + $0x170] sm:$0xff] }
  0x74   :  { %649 = vmatpush.msra.mxu0 %v244_v39  ;;  %668 = vmatpush.msra.mxu1 %v312_v40  ;;  %v356_v57 = vld [vmem:[%s2656_s1 + $0x868] sm:$0xff]  ;;  %v201_v30 = vld [vmem:[%s2656_s1 + $0x390] sm:$0xff] }
  0x75   :  { %689 = vmatpush.msra.mxu2 %v372_v41  ;;  %708 = vmatpush.msra.mxu3 %v440_v42  ;;  %v424_v58 = vld [vmem:[%s2656_s1 + $0xa88] sm:$0xff]  ;;  %v261_v31 = vld [vmem:[%s2656_s1 + $0x570] sm:$0xff] }
  0x76   :  { %650 = vmatpush.msra.mxu0 %v240_v43  ;;  %669 = vmatpush.msra.mxu1 %v308_v44  ;;  %v224_v59 = vld [vmem:[%s2656_s1 + $0x448] sm:$0xff]  ;;  %v329_v32 = vld [vmem:[%s2656_s1 + $0x790] sm:$0xff] }
  0x77   :  { %690 = vmatpush.msra.mxu2 %v368_v45  ;;  %709 = vmatpush.msra.mxu3 %v436_v46  ;;  %v292_v60 = vld [vmem:[%s2656_s1 + $0x668] sm:$0xff]  ;;  %v129_v33 = vld [vmem:[%s2656_s1 + $0x150] sm:$0xff] }
  0x78   :  { %651 = vmatpush.msra.mxu0 %v236_v47  ;;  %670 = vmatpush.msra.mxu1 %v304_v48  ;;  %v352_v61 = vld [vmem:[%s2656_s1 + $0x848] sm:$0xff]  ;;  %v197_v34 = vld [vmem:[%s2656_s1 + $0x370] sm:$0xff] }
  0x79   :  { %691 = vmatpush.msra.mxu2 %v364_v49  ;;  %710 = vmatpush.msra.mxu3 %v432_v50  ;;  %v420_v62 = vld [vmem:[%s2656_s1 + $0xa68] sm:$0xff]  ;;  %v257_v35 = vld [vmem:[%s2656_s1 + $0x550] sm:$0xff] }
  0x7a   :  { %652 = vmatpush.msra.mxu0 %v232_v51  ;;  %671 = vmatpush.msra.mxu1 %v300_v52  ;;  %v220_v63 = vld [vmem:[%s2656_s1 + $0x428] sm:$0xff]  ;;  %v325_v36 = vld [vmem:[%s2656_s1 + $0x770] sm:$0xff] }
  0x7b   :  { %692 = vmatpush.msra.mxu2 %v360_v53  ;;  %711 = vmatpush.msra.mxu3 %v428_v54  ;;  %v288_v2 = vld [vmem:[%s2656_s1 + $0x648] sm:$0xff]  ;;  %v125_v37 = vld [vmem:[%s2656_s1 + $0x130] sm:$0xff] }
  0x7c   :  { %617 = vmatmul.f32.vlgmr.msrb.gmra.mxu2 %v1630_v0  ;;  %653 = vmatpush.msra.mxu0 %v228_v55  ;;  %v348_v3 = vld [vmem:[%s2656_s1 + $0x828] sm:$0xff]  ;;  %v193_v38 = vld [vmem:[%s2656_s1 + $0x350] sm:$0xff] }
  0x7d   :  { %672 = vmatpush.msra.mxu1 %v296_v56  ;;  %693 = vmatpush.msra.mxu2 %v356_v57  ;;  %v416_v4 = vld [vmem:[%s2656_s1 + $0xa48] sm:$0xff]  ;;  %v253_v39 = vld [vmem:[%s2656_s1 + $0x530] sm:$0xff] }
  0x7e   :  { %712 = vmatpush.msra.mxu3 %v424_v58  ;;  %654 = vmatpush.msra.mxu0 %v224_v59  ;;  %v216_v5 = vld [vmem:[%s2656_s1 + $0x408] sm:$0xff]  ;;  %v321_v40 = vld [vmem:[%s2656_s1 + $0x750] sm:$0xff] }
  0x7f   :  { %637 = vmatmul.f32.vlgmr.msrb.gmra.mxu3 %v1646_v6  ;;  %673 = vmatpush.msra.mxu1 %v292_v60  ;;  %v284_v8 = vld [vmem:[%s2656_s1 + $0x628] sm:$0xff]  ;;  %v121_v41 = vld [vmem:[%s2656_s1 + $0x110] sm:$0xff] }
  0x80   :  { %694 = vmatpush.msra.mxu2 %v352_v61  ;;  %713 = vmatpush.msra.mxu3 %v420_v62  ;;  %v344_v9 = vld [vmem:[%s2656_s1 + $0x808] sm:$0xff]  ;;  %v189_v42 = vld [vmem:[%s2656_s1 + $0x330] sm:$0xff] }
  0x81   :  { %655 = vmatpush.msra.mxu0 %v220_v63  ;;  %674 = vmatpush.msra.mxu1 %v288_v2  ;;  %v412_v10 = vld [vmem:[%s2656_s1 + $0xa28] sm:$0xff]  ;;  %v249_v43 = vld [vmem:[%s2656_s1 + $0x510] sm:$0xff] }
  0x82   :  { %695 = vmatpush.msra.mxu2 %v348_v3  ;;  %714 = vmatpush.msra.mxu3 %v416_v4  ;;  %v280_v13 = vld [vmem:[%s2656_s1 + $0x608] sm:$0xff]  ;;  %v317_v44 = vld [vmem:[%s2656_s1 + $0x730] sm:$0xff] }
  0x83   :  { %656 = vmatpush.msra.mxu0 %v216_v5  ;;  %675 = vmatpush.msra.mxu1 %v284_v8  ;;  %v408_v14 = vld [vmem:[%s2656_s1 + $0xa08] sm:$0xff]  ;;  %v117_v45 = vld [vmem:[%s2656_s1 + $0xf0] sm:$0xff] }
  0x84   :  { %696 = vmatpush.msra.mxu2 %v344_v9  ;;  %715 = vmatpush.msra.mxu3 %v412_v10  ;;  %v185_v46 = vld [vmem:[%s2656_s1 + $0x310] sm:$0xff] }
  0x85   :  { %697 = vmatmul.f32.vlgmr.msra.gmra.mxu2 %v1705_v25  ;;  %721 = vmatpush.msrb.mxu0 %v149_v11  ;;  %v245_v47 = vld [vmem:[%s2656_s1 + $0x4f0] sm:$0xff] }
  0x86   :  { %761 = vmatpush.msrb.mxu2 %v277_v12  ;;  %676 = vmatpush.msra.mxu1 %v280_v13  ;;  %v313_v48 = vld [vmem:[%s2656_s1 + $0x710] sm:$0xff] }
  0x87   :  { %716 = vmatpush.msra.mxu3 %v408_v14  ;;  %657 = vmatmul.f32.vlgmr.msra.gmra.mxu0 %v1632_v1  ;;  %v113_v49 = vld [vmem:[%s2656_s1 + $0xd0] sm:$0xff] }
  0x88   :  { %717 = vmatmul.f32.vlgmr.msra.gmra.mxu3 %v1716_v29  ;;  %722 = vmatpush.msrb.mxu0 %v145_v15  ;;  %v181_v50 = vld [vmem:[%s2656_s1 + $0x2f0] sm:$0xff] }
  0x89   :  { %741 = vmatpush.msrb.mxu1 %v213_v16  ;;  %762 = vmatpush.msrb.mxu2 %v273_v17  ;;  %v241_v51 = vld [vmem:[%s2656_s1 + $0x4d0] sm:$0xff] }
  0x8a   :  { %781 = vmatpush.msrb.mxu3 %v341_v18  ;;  %677 = vmatmul.f32.vlgmr.msra.gmra.mxu1 %v1648_v7  ;;  %v309_v52 = vld [vmem:[%s2656_s1 + $0x6f0] sm:$0xff]  ;;  %v150_v18 = vld [vmem:[%s2656_s1 + $0x1f8] sm:$0xff] }
  0x8b   :  { %723 = vmatpush.msrb.mxu0 %v141_v19  ;;  %742 = vmatpush.msrb.mxu1 %v209_v20  ;;  %v109_v53 = vld [vmem:[%s2656_s1 + $0xb0] sm:$0xff] }
  0x8c   :  { %763 = vmatpush.msrb.mxu2 %v269_v21  ;;  %782 = vmatpush.msrb.mxu3 %v337_v22  ;;  %v177_v54 = vld [vmem:[%s2656_s1 + $0x2d0] sm:$0xff] }
  0x8d   :  { %724 = vmatpush.msrb.mxu0 %v137_v23  ;;  %743 = vmatpush.msrb.mxu1 %v205_v24  ;;  %v237_v55 = vld [vmem:[%s2656_s1 + $0x4b0] sm:$0xff]  ;;  %v146_v23 = vld [vmem:[%s2656_s1 + $0x1d8] sm:$0xff] }
  0x8e   :  { %764 = vmatpush.msrb.mxu2 %v265_v26  ;;  %783 = vmatpush.msrb.mxu3 %v333_v27  ;;  %v305_v56 = vld [vmem:[%s2656_s1 + $0x6d0] sm:$0xff]  ;;  %v214_v24 = vld [vmem:[%s2656_s1 + $0x3f8] sm:$0xff] }
  0x8f   :  { %725 = vmatpush.msrb.mxu0 %v133_v28  ;;  %744 = vmatpush.msrb.mxu1 %v201_v30  ;;  %v105_v57 = vld [vmem:[%s2656_s1 + $0x90] sm:$0xff]  ;;  %v142_v28 = vld [vmem:[%s2656_s1 + $0x1b8] sm:$0xff] }
  0x90   :  { %765 = vmatpush.msrb.mxu2 %v261_v31  ;;  %784 = vmatpush.msrb.mxu3 %v329_v32  ;;  %v173_v58 = vld [vmem:[%s2656_s1 + $0x2b0] sm:$0xff]  ;;  %v210_v30 = vld [vmem:[%s2656_s1 + $0x3d8] sm:$0xff] }
  0x91   :  { %726 = vmatpush.msrb.mxu0 %v129_v33  ;;  %745 = vmatpush.msrb.mxu1 %v197_v34  ;;  %v233_v59 = vld [vmem:[%s2656_s1 + $0x490] sm:$0xff]  ;;  %v138_v33 = vld [vmem:[%s2656_s1 + $0x198] sm:$0xff] }
  0x92   :  { %766 = vmatpush.msrb.mxu2 %v257_v35  ;;  %785 = vmatpush.msrb.mxu3 %v325_v36  ;;  %v301_v60 = vld [vmem:[%s2656_s1 + $0x6b0] sm:$0xff]  ;;  %v206_v34 = vld [vmem:[%s2656_s1 + $0x3b8] sm:$0xff] }
  0x93   :  { %727 = vmatpush.msrb.mxu0 %v125_v37  ;;  %746 = vmatpush.msrb.mxu1 %v193_v38  ;;  %v101_v61 = vld [vmem:[%s2656_s1 + $0x70] sm:$0xff]  ;;  %v134_v37 = vld [vmem:[%s2656_s1 + $0x178] sm:$0xff] }
  0x94   :  { %767 = vmatpush.msrb.mxu2 %v253_v39  ;;  %786 = vmatpush.msrb.mxu3 %v321_v40  ;;  %v169_v62 = vld [vmem:[%s2656_s1 + $0x290] sm:$0xff]  ;;  %v202_v38 = vld [vmem:[%s2656_s1 + $0x398] sm:$0xff] }
  0x95   :  { %728 = vmatpush.msrb.mxu0 %v121_v41  ;;  %747 = vmatpush.msrb.mxu1 %v189_v42  ;;  %v229_v63 = vld [vmem:[%s2656_s1 + $0x470] sm:$0xff]  ;;  %v130_v41 = vld [vmem:[%s2656_s1 + $0x158] sm:$0xff] }
  0x96   :  { %768 = vmatpush.msrb.mxu2 %v249_v43  ;;  %787 = vmatpush.msrb.mxu3 %v317_v44  ;;  %v297_v2 = vld [vmem:[%s2656_s1 + $0x690] sm:$0xff]  ;;  %v198_v42 = vld [vmem:[%s2656_s1 + $0x378] sm:$0xff] }
  0x97   :  { %729 = vmatpush.msrb.mxu0 %v117_v45  ;;  %748 = vmatpush.msrb.mxu1 %v185_v46  ;;  %v97_v3 = vld [vmem:[%s2656_s1 + $0x50] sm:$0xff]  ;;  %v126_v45 = vld [vmem:[%s2656_s1 + $0x138] sm:$0xff] }
  0x98   :  { %769 = vmatpush.msrb.mxu2 %v245_v47  ;;  %788 = vmatpush.msrb.mxu3 %v313_v48  ;;  %v165_v4 = vld [vmem:[%s2656_s1 + $0x270] sm:$0xff]  ;;  %v194_v46 = vld [vmem:[%s2656_s1 + $0x358] sm:$0xff] }
  0x99   :  { %730 = vmatpush.msrb.mxu0 %v113_v49  ;;  %749 = vmatpush.msrb.mxu1 %v181_v50  ;;  %v225_v5 = vld [vmem:[%s2656_s1 + $0x450] sm:$0xff]  ;;  %v122_v49 = vld [vmem:[%s2656_s1 + $0x118] sm:$0xff] }
  0x9a   :  { %770 = vmatpush.msrb.mxu2 %v241_v51  ;;  %789 = vmatpush.msrb.mxu3 %v309_v52  ;;  %v293_v8 = vld [vmem:[%s2656_s1 + $0x670] sm:$0xff]  ;;  %v190_v50 = vld [vmem:[%s2656_s1 + $0x338] sm:$0xff] }
  0x9b   :  { %731 = vmatpush.msrb.mxu0 %v109_v53  ;;  %750 = vmatpush.msrb.mxu1 %v177_v54  ;;  %v93_v9 = vld [vmem:[%s2656_s1 + $0x30] sm:$0xff]  ;;  %v118_v53 = vld [vmem:[%s2656_s1 + $0xf8] sm:$0xff] }
  0x9c   :  { %771 = vmatpush.msrb.mxu2 %v237_v55  ;;  %790 = vmatpush.msrb.mxu3 %v305_v56  ;;  %v161_v10 = vld [vmem:[%s2656_s1 + $0x250] sm:$0xff]  ;;  %v186_v54 = vld [vmem:[%s2656_s1 + $0x318] sm:$0xff] }
  0x9d   :  { %732 = vmatpush.msrb.mxu0 %v105_v57  ;;  %751 = vmatpush.msrb.mxu1 %v173_v58  ;;  %v221_v11 = vld [vmem:[%s2656_s1 + $0x430] sm:$0xff]  ;;  %v114_v57 = vld [vmem:[%s2656_s1 + $0xd8] sm:$0xff] }
  0x9e   :  { %772 = vmatpush.msrb.mxu2 %v233_v59  ;;  %791 = vmatpush.msrb.mxu3 %v301_v60  ;;  %v289_v12 = vld [vmem:[%s2656_s1 + $0x650] sm:$0xff]  ;;  %v182_v58 = vld [vmem:[%s2656_s1 + $0x2f8] sm:$0xff] }
  0x9f   :  { %733 = vmatpush.msrb.mxu0 %v101_v61  ;;  %752 = vmatpush.msrb.mxu1 %v169_v62  ;;  %v89_v13 = vld [vmem:[%s2656_s1 + $0x10] sm:$0xff]  ;;  %v110_v61 = vld [vmem:[%s2656_s1 + $0xb8] sm:$0xff] }
  0xa0   :  { %773 = vmatpush.msrb.mxu2 %v229_v63  ;;  %792 = vmatpush.msrb.mxu3 %v297_v2  ;;  %v157_v14 = vld [vmem:[%s2656_s1 + $0x230] sm:$0xff]  ;;  %v178_v62 = vld [vmem:[%s2656_s1 + $0x2d8] sm:$0xff] }
  0xa1   :  { %734 = vmatpush.msrb.mxu0 %v97_v3  ;;  %753 = vmatpush.msrb.mxu1 %v165_v4  ;;  %v217_v15 = vld [vmem:[%s2656_s1 + $0x410] sm:$0xff]  ;;  %v106_v3 = vld [vmem:[%s2656_s1 + $0x98] sm:$0xff] }
  0xa2   :  { %774 = vmatpush.msrb.mxu2 %v225_v5  ;;  %793 = vmatpush.msrb.mxu3 %v293_v8  ;;  %v285_v16 = vld [vmem:[%s2656_s1 + $0x630] sm:$0xff]  ;;  %v174_v4 = vld [vmem:[%s2656_s1 + $0x2b8] sm:$0xff] }
  0xa3   :  { %735 = vmatpush.msrb.mxu0 %v93_v9  ;;  %754 = vmatpush.msrb.mxu1 %v161_v10  ;;  %v405_v17 = vld [vmem:[%s2656_s1 + $0x9f0] sm:$0xff]  ;;  %v102_v9 = vld [vmem:[%s2656_s1 + $0x78] sm:$0xff] }
  0xa4   :  { %775 = vmatpush.msrb.mxu2 %v221_v11  ;;  %794 = vmatpush.msrb.mxu3 %v289_v12  ;;  %v153_v19 = vld [vmem:[%s2656_s1 + $0x210] sm:$0xff]  ;;  %v170_v10 = vld [vmem:[%s2656_s1 + $0x298] sm:$0xff] }
  0xa5   :  { %736 = vmatpush.msrb.mxu0 %v89_v13  ;;  %755 = vmatpush.msrb.mxu1 %v157_v14  ;;  %v281_v20 = vld [vmem:[%s2656_s1 + $0x610] sm:$0xff]  ;;  %v98_v13 = vld [vmem:[%s2656_s1 + $0x58] sm:$0xff] }
  0xa6   :  { %776 = vmatpush.msrb.mxu2 %v217_v15  ;;  %795 = vmatpush.msrb.mxu3 %v285_v16  ;;  %v401_v21 = vld [vmem:[%s2656_s1 + $0x9d0] sm:$0xff]  ;;  %v166_v14 = vld [vmem:[%s2656_s1 + $0x278] sm:$0xff] }
  0xa7   :  { %v469_v22 = vld [vmem:[%s2656_s1 + $0xbf0] sm:$0xff]  ;;  %801 = vmatpush.msra.mxu0 %v405_v17  ;;  %756 = vmatpush.msrb.mxu1 %v153_v19  ;;  %v94_v17 = vld [vmem:[%s2656_s1 + $0x38] sm:$0xff] }
  0xa8   :  { %841 = vmatpush.msra.mxu2 %v150_v18  ;;  %796 = vmatpush.msrb.mxu3 %v281_v20  ;;  %v397_v26 = vld [vmem:[%s2656_s1 + $0x9b0] sm:$0xff]  ;;  %v162_v18 = vld [vmem:[%s2656_s1 + $0x258] sm:$0xff] }
  0xa9   :  { %v465_v27 = vld [vmem:[%s2656_s1 + $0xbd0] sm:$0xff]  ;;  %802 = vmatpush.msra.mxu0 %v401_v21  ;;  %821 = vmatpush.msra.mxu1 %v469_v22  ;;  %v90_v21 = vld [vmem:[%s2656_s1 + $0x18] sm:$0xff] }
  0xaa   :  { %842 = vmatpush.msra.mxu2 %v146_v23  ;;  %861 = vmatpush.msra.mxu3 %v214_v24  ;;  %v393_v31 = vld [vmem:[%s2656_s1 + $0x990] sm:$0xff]  ;;  %v158_v22 = vld [vmem:[%s2656_s1 + $0x238] sm:$0xff] }
  0xab   :  { %v461_v32 = vld [vmem:[%s2656_s1 + $0xbb0] sm:$0xff]  ;;  %803 = vmatpush.msra.mxu0 %v397_v26  ;;  %822 = vmatpush.msra.mxu1 %v465_v27  ;;  %v406_v23 = vld [vmem:[%s2656_s1 + $0x9f8] sm:$0xff] }
  0xac   :  { %843 = vmatpush.msra.mxu2 %v142_v28  ;;  %862 = vmatpush.msra.mxu3 %v210_v30  ;;  %v389_v35 = vld [vmem:[%s2656_s1 + $0x970] sm:$0xff]  ;;  %v278_v24 = vld [vmem:[%s2656_s1 + $0x5f8] sm:$0xff] }
  0xad   :  { %v457_v36 = vld [vmem:[%s2656_s1 + $0xb90] sm:$0xff]  ;;  %804 = vmatpush.msra.mxu0 %v393_v31  ;;  %823 = vmatpush.msra.mxu1 %v461_v32  ;;  %v154_v27 = vld [vmem:[%s2656_s1 + $0x218] sm:$0xff] }
  0xae   :  { %844 = vmatpush.msra.mxu2 %v138_v33  ;;  %863 = vmatpush.msra.mxu3 %v206_v34  ;;  %v385_v39 = vld [vmem:[%s2656_s1 + $0x950] sm:$0xff]  ;;  %v274_v28 = vld [vmem:[%s2656_s1 + $0x5d8] sm:$0xff] }
  0xaf   :  { %v453_v40 = vld [vmem:[%s2656_s1 + $0xb70] sm:$0xff]  ;;  %805 = vmatpush.msra.mxu0 %v389_v35  ;;  %824 = vmatpush.msra.mxu1 %v457_v36  ;;  %v402_v30 = vld [vmem:[%s2656_s1 + $0x9d8] sm:$0xff] }
  0xb0   :  { %845 = vmatpush.msra.mxu2 %v134_v37  ;;  %864 = vmatpush.msra.mxu3 %v202_v38  ;;  %v381_v43 = vld [vmem:[%s2656_s1 + $0x930] sm:$0xff]  ;;  %v470_v31 = vld [vmem:[%s2656_s1 + $0xbf8] sm:$0xff] }
  0xb1   :  { %v449_v44 = vld [vmem:[%s2656_s1 + $0xb50] sm:$0xff]  ;;  %806 = vmatpush.msra.mxu0 %v385_v39  ;;  %825 = vmatpush.msra.mxu1 %v453_v40  ;;  %v342_v32 = vld [vmem:[%s2656_s1 + $0x7f8] sm:$0xff] }
  0xb2   :  { %846 = vmatpush.msra.mxu2 %v130_v41  ;;  %865 = vmatpush.msra.mxu3 %v198_v42  ;;  %v377_v47 = vld [vmem:[%s2656_s1 + $0x910] sm:$0xff]  ;;  %v270_v33 = vld [vmem:[%s2656_s1 + $0x5b8] sm:$0xff] }
  0xb3   :  { %v445_v48 = vld [vmem:[%s2656_s1 + $0xb30] sm:$0xff]  ;;  %807 = vmatpush.msra.mxu0 %v381_v43  ;;  %826 = vmatpush.msra.mxu1 %v449_v44  ;;  %v398_v34 = vld [vmem:[%s2656_s1 + $0x9b8] sm:$0xff] }
  0xb4   :  { %847 = vmatpush.msra.mxu2 %v126_v45  ;;  %866 = vmatpush.msra.mxu3 %v194_v46  ;;  %v373_v51 = vld [vmem:[%s2656_s1 + $0x8f0] sm:$0xff]  ;;  %v466_v35 = vld [vmem:[%s2656_s1 + $0xbd8] sm:$0xff] }
  0xb5   :  { %v441_v52 = vld [vmem:[%s2656_s1 + $0xb10] sm:$0xff]  ;;  %808 = vmatpush.msra.mxu0 %v377_v47  ;;  %827 = vmatpush.msra.mxu1 %v445_v48  ;;  %v338_v36 = vld [vmem:[%s2656_s1 + $0x7d8] sm:$0xff] }
  0xb6   :  { %848 = vmatpush.msra.mxu2 %v122_v49  ;;  %867 = vmatpush.msra.mxu3 %v190_v50  ;;  %v369_v55 = vld [vmem:[%s2656_s1 + $0x8d0] sm:$0xff]  ;;  %v266_v37 = vld [vmem:[%s2656_s1 + $0x598] sm:$0xff] }
  0xb7   :  { %v437_v56 = vld [vmem:[%s2656_s1 + $0xaf0] sm:$0xff]  ;;  %809 = vmatpush.msra.mxu0 %v373_v51  ;;  %828 = vmatpush.msra.mxu1 %v441_v52  ;;  %v394_v38 = vld [vmem:[%s2656_s1 + $0x998] sm:$0xff] }
  0xb8   :  { %849 = vmatpush.msra.mxu2 %v118_v53  ;;  %868 = vmatpush.msra.mxu3 %v186_v54  ;;  %v365_v59 = vld [vmem:[%s2656_s1 + $0x8b0] sm:$0xff]  ;;  %v462_v39 = vld [vmem:[%s2656_s1 + $0xbb8] sm:$0xff] }
  0xb9   :  { %v433_v60 = vld [vmem:[%s2656_s1 + $0xad0] sm:$0xff]  ;;  %810 = vmatpush.msra.mxu0 %v369_v55  ;;  %829 = vmatpush.msra.mxu1 %v437_v56  ;;  %v334_v40 = vld [vmem:[%s2656_s1 + $0x7b8] sm:$0xff] }
  0xba   :  { %850 = vmatpush.msra.mxu2 %v114_v57  ;;  %869 = vmatpush.msra.mxu3 %v182_v58  ;;  %v361_v63 = vld [vmem:[%s2656_s1 + $0x890] sm:$0xff]  ;;  %v262_v41 = vld [vmem:[%s2656_s1 + $0x578] sm:$0xff] }
  0xbb   :  { %811 = vmatpush.msra.mxu0 %v365_v59  ;;  %830 = vmatpush.msra.mxu1 %v433_v60  ;;  %v429_v2 = vld [vmem:[%s2656_s1 + $0xab0] sm:$0xff]  ;;  %v390_v42 = vld [vmem:[%s2656_s1 + $0x978] sm:$0xff] }
  0xbc   :  { %851 = vmatpush.msra.mxu2 %v110_v61  ;;  %870 = vmatpush.msra.mxu3 %v178_v62  ;;  %v357_v5 = vld [vmem:[%s2656_s1 + $0x870] sm:$0xff]  ;;  %v458_v43 = vld [vmem:[%s2656_s1 + $0xb98] sm:$0xff] }
  0xbd   :  { %777 = vmatmul.f32.vlgmr.msrb.gmra.mxu2 %v1632_v1  ;;  %812 = vmatpush.msra.mxu0 %v361_v63  ;;  %v425_v8 = vld [vmem:[%s2656_s1 + $0xa90] sm:$0xff]  ;;  %v330_v44 = vld [vmem:[%s2656_s1 + $0x798] sm:$0xff] }
  0xbe   :  { %831 = vmatpush.msra.mxu1 %v429_v2  ;;  %852 = vmatpush.msra.mxu2 %v106_v3  ;;  %v353_v11 = vld [vmem:[%s2656_s1 + $0x850] sm:$0xff]  ;;  %v258_v45 = vld [vmem:[%s2656_s1 + $0x558] sm:$0xff] }
  0xbf   :  { %871 = vmatpush.msra.mxu3 %v174_v4  ;;  %737 = vmatmul.f32.vlgmr.msrb.gmra.mxu0 %v1630_v0  ;;  %v421_v12 = vld [vmem:[%s2656_s1 + $0xa70] sm:$0xff]  ;;  %v386_v46 = vld [vmem:[%s2656_s1 + $0x958] sm:$0xff] }
  0xc0   :  { %797 = vmatmul.f32.vlgmr.msrb.gmra.mxu3 %v1648_v7  ;;  %813 = vmatpush.msra.mxu0 %v357_v5  ;;  %v349_v15 = vld [vmem:[%s2656_s1 + $0x830] sm:$0xff]  ;;  %v454_v47 = vld [vmem:[%s2656_s1 + $0xb78] sm:$0xff] }
  0xc1   :  { %832 = vmatpush.msra.mxu1 %v425_v8  ;;  %853 = vmatpush.msra.mxu2 %v102_v9  ;;  %v417_v16 = vld [vmem:[%s2656_s1 + $0xa50] sm:$0xff]  ;;  %v326_v48 = vld [vmem:[%s2656_s1 + $0x778] sm:$0xff] }
  0xc2   :  { %872 = vmatpush.msra.mxu3 %v170_v10  ;;  %757 = vmatmul.f32.vlgmr.msrb.gmra.mxu1 %v1646_v6  ;;  %v345_v19 = vld [vmem:[%s2656_s1 + $0x810] sm:$0xff]  ;;  %v254_v49 = vld [vmem:[%s2656_s1 + $0x538] sm:$0xff] }
  0xc3   :  { %814 = vmatpush.msra.mxu0 %v353_v11  ;;  %833 = vmatpush.msra.mxu1 %v421_v12  ;;  %v413_v20 = vld [vmem:[%s2656_s1 + $0xa30] sm:$0xff]  ;;  %v382_v50 = vld [vmem:[%s2656_s1 + $0x938] sm:$0xff] }
  0xc4   :  { %854 = vmatpush.msra.mxu2 %v98_v13  ;;  %873 = vmatpush.msra.mxu3 %v166_v14  ;;  %v409_v26 = vld [vmem:[%s2656_s1 + $0xa10] sm:$0xff]  ;;  %v450_v51 = vld [vmem:[%s2656_s1 + $0xb58] sm:$0xff] }
  0xc5   :  { %815 = vmatpush.msra.mxu0 %v349_v15  ;;  %834 = vmatpush.msra.mxu1 %v417_v16  ;;  %v322_v52 = vld [vmem:[%s2656_s1 + $0x758] sm:$0xff] }
  0xc6   :  { %855 = vmatpush.msra.mxu2 %v94_v17  ;;  %874 = vmatpush.msra.mxu3 %v162_v18  ;;  %v250_v53 = vld [vmem:[%s2656_s1 + $0x518] sm:$0xff] }
  0xc7   :  { %816 = vmatpush.msra.mxu0 %v345_v19  ;;  %835 = vmatpush.msra.mxu1 %v413_v20  ;;  %v378_v54 = vld [vmem:[%s2656_s1 + $0x918] sm:$0xff] }
  0xc8   :  { %856 = vmatpush.msra.mxu2 %v90_v21  ;;  %875 = vmatpush.msra.mxu3 %v158_v22  ;;  %v446_v55 = vld [vmem:[%s2656_s1 + $0xb38] sm:$0xff] }
  0xc9   :  { %817 = vmatmul.f32.vlgmr.msra.gmra.mxu0 %v1705_v25  ;;  %836 = vmatpush.msra.mxu1 %v409_v26  ;;  %v318_v56 = vld [vmem:[%s2656_s1 + $0x738] sm:$0xff] }
  0xca   :  { %921 = vmatpush.msrb.mxu2 %v406_v23  ;;  %881 = vmatpush.msrb.mxu0 %v278_v24  ;;  %v246_v57 = vld [vmem:[%s2656_s1 + $0x4f8] sm:$0xff] }
  0xcb   :  { %876 = vmatpush.msra.mxu3 %v154_v27  ;;  %837 = vmatmul.f32.vlgmr.msra.gmra.mxu1 %v1716_v29  ;;  %v374_v58 = vld [vmem:[%s2656_s1 + $0x8f8] sm:$0xff] }
  0xcc   :  { %882 = vmatpush.msrb.mxu0 %v274_v28  ;;  %922 = vmatpush.msrb.mxu2 %v402_v30  ;;  %v442_v59 = vld [vmem:[%s2656_s1 + $0xb18] sm:$0xff] }
  0xcd   :  { %941 = vmatpush.msrb.mxu3 %v470_v31  ;;  %901 = vmatpush.msrb.mxu1 %v342_v32  ;;  %v314_v60 = vld [vmem:[%s2656_s1 + $0x718] sm:$0xff]  ;;  %v975_v31 = vld [vmem:[%s2658_s3 + $0x70] sm:$0xff] }
  0xce   :  { %883 = vmatpush.msrb.mxu0 %v270_v33  ;;  %923 = vmatpush.msrb.mxu2 %v398_v34  ;;  %v242_v61 = vld [vmem:[%s2656_s1 + $0x4d8] sm:$0xff]  ;;  %v974_v33 = vld [vmem:[%s2658_s3 + $0x68] sm:$0xff] }
  0xcf   :  { %942 = vmatpush.msrb.mxu3 %v466_v35  ;;  %902 = vmatpush.msrb.mxu1 %v338_v36  ;;  %v370_v62 = vld [vmem:[%s2656_s1 + $0x8d8] sm:$0xff]  ;;  %v1007_v36 = vld [vmem:[%s2658_s3 + $0x170] sm:$0xff] }
  0xd0   :  { %884 = vmatpush.msrb.mxu0 %v266_v37  ;;  %924 = vmatpush.msrb.mxu2 %v394_v38  ;;  %v438_v63 = vld [vmem:[%s2656_s1 + $0xaf8] sm:$0xff] }
  0xd1   :  { %943 = vmatpush.msrb.mxu3 %v462_v39  ;;  %903 = vmatpush.msrb.mxu1 %v334_v40  ;;  %v310_v2 = vld [vmem:[%s2656_s1 + $0x6f8] sm:$0xff]  ;;  %v990_v39 = vld [vmem:[%s2658_s3 + $0xe8] sm:$0xff] }
  0xd2   :  { %885 = vmatpush.msrb.mxu0 %v262_v41  ;;  %925 = vmatpush.msrb.mxu2 %v390_v42  ;;  %v238_v3 = vld [vmem:[%s2656_s1 + $0x4b8] sm:$0xff]  ;;  %v1006_v40 = vld [vmem:[%s2658_s3 + $0x168] sm:$0xff]  ;;  %v971_v41 = vld [vmem:[%s2658_s3 + $0x50] sm:$0xff] }
  0xd3   :  { %944 = vmatpush.msrb.mxu3 %v458_v43  ;;  %904 = vmatpush.msrb.mxu1 %v330_v44  ;;  %v366_v4 = vld [vmem:[%s2656_s1 + $0x8b8] sm:$0xff]  ;;  %v989_v42 = vld [vmem:[%s2658_s3 + $0xe0] sm:$0xff] }
  0xd4   :  { %886 = vmatpush.msrb.mxu0 %v258_v45  ;;  %926 = vmatpush.msrb.mxu2 %v386_v46  ;;  %v434_v5 = vld [vmem:[%s2656_s1 + $0xad8] sm:$0xff]  ;;  %v1005_v43 = vld [vmem:[%s2658_s3 + $0x160] sm:$0xff]  ;;  %v970_v45 = vld [vmem:[%s2658_s3 + $0x48] sm:$0xff] }
  0xd5   :  { %945 = vmatpush.msrb.mxu3 %v454_v47  ;;  %905 = vmatpush.msrb.mxu1 %v326_v48  ;;  %v306_v8 = vld [vmem:[%s2656_s1 + $0x6d8] sm:$0xff] }
  0xd6   :  { %887 = vmatpush.msrb.mxu0 %v254_v49  ;;  %927 = vmatpush.msrb.mxu2 %v382_v50  ;;  %v234_v9 = vld [vmem:[%s2656_s1 + $0x498] sm:$0xff]  ;;  %v969_v49 = vld [vmem:[%s2658_s3 + $0x40] sm:$0xff] }
  0xd7   :  { %946 = vmatpush.msrb.mxu3 %v450_v51  ;;  %906 = vmatpush.msrb.mxu1 %v322_v52  ;;  %v362_v10 = vld [vmem:[%s2656_s1 + $0x898] sm:$0xff]  ;;  %v987_v51 = vld [vmem:[%s2658_s3 + $0xd0] sm:$0xff] }
  0xd8   :  { %888 = vmatpush.msrb.mxu0 %v250_v53  ;;  %928 = vmatpush.msrb.mxu2 %v378_v54  ;;  %v430_v11 = vld [vmem:[%s2656_s1 + $0xab8] sm:$0xff]  ;;  %v1003_v52 = vld [vmem:[%s2658_s3 + $0x150] sm:$0xff] }
  0xd9   :  { %947 = vmatpush.msrb.mxu3 %v446_v55  ;;  %907 = vmatpush.msrb.mxu1 %v318_v56  ;;  %v230_v12 = vld [vmem:[%s2656_s1 + $0x478] sm:$0xff]  ;;  %v986_v55 = vld [vmem:[%s2658_s3 + $0xc8] sm:$0xff] }
  0xda   :  { %889 = vmatpush.msrb.mxu0 %v246_v57  ;;  %929 = vmatpush.msrb.mxu2 %v374_v58  ;;  %v302_v13 = vld [vmem:[%s2656_s1 + $0x6b8] sm:$0xff]  ;;  %v1002_v56 = vld [vmem:[%s2658_s3 + $0x148] sm:$0xff]  ;;  %v967_v58 = vld [vmem:[%s2658_s3 + $0x30] sm:$0xff] }
  0xdb   :  { %948 = vmatpush.msrb.mxu3 %v442_v59  ;;  %908 = vmatpush.msrb.mxu1 %v314_v60  ;;  %v358_v14 = vld [vmem:[%s2656_s1 + $0x878] sm:$0xff]  ;;  %v985_v59 = vld [vmem:[%s2658_s3 + $0xc0] sm:$0xff] }
  0xdc   :  { %890 = vmatpush.msrb.mxu0 %v242_v61  ;;  %930 = vmatpush.msrb.mxu2 %v370_v62  ;;  %v426_v15 = vld [vmem:[%s2656_s1 + $0xa98] sm:$0xff]  ;;  %v1001_v60 = vld [vmem:[%s2658_s3 + $0x140] sm:$0xff] }
  0xdd   :  { %949 = vmatpush.msrb.mxu3 %v438_v63  ;;  %909 = vmatpush.msrb.mxu1 %v310_v2  ;;  %v226_v16 = vld [vmem:[%s2656_s1 + $0x458] sm:$0xff]  ;;  %v966_v63 = vld [vmem:[%s2658_s3 + $0x28] sm:$0xff] }
  0xde   :  { %891 = vmatpush.msrb.mxu0 %v238_v3  ;;  %931 = vmatpush.msrb.mxu2 %v366_v4  ;;  %v298_v17 = vld [vmem:[%s2656_s1 + $0x698] sm:$0xff] }
  0xdf   :  { %950 = vmatpush.msrb.mxu3 %v434_v5  ;;  %910 = vmatpush.msrb.mxu1 %v306_v8  ;;  %v354_v18 = vld [vmem:[%s2656_s1 + $0x858] sm:$0xff]  ;;  %v965_v5 = vld [vmem:[%s2658_s3 + $0x20] sm:$0xff] }
  0xe0   :  { %892 = vmatpush.msrb.mxu0 %v234_v9  ;;  %932 = vmatpush.msrb.mxu2 %v362_v10  ;;  %v222_v19 = vld [vmem:[%s2656_s1 + $0x438] sm:$0xff]  ;;  %v983_v10 = vld [vmem:[%s2658_s3 + $0xb0] sm:$0xff] }
  0xe1   :  { %951 = vmatpush.msrb.mxu3 %v430_v11  ;;  %857 = vmatmul.f32.vlgmr.msra.gmra.mxu2 %v1630_v0  ;;  %v422_v0 = vld [vmem:[%s2656_s1 + $0xa78] sm:$0xff]  ;;  %v518_v46 = vpop.f32.mrf.mxu1 }
  0xe2   :  { %893 = vmatpush.msrb.mxu0 %v230_v12  ;;  %911 = vmatpush.msrb.mxu1 %v302_v13  ;;  %v294_v20 = vld [vmem:[%s2656_s1 + $0x678] sm:$0xff]  ;;  %v558_v57 = vpop.f32.mrf.mxu3 }
  0xe3   :  { %933 = vmatpush.msrb.mxu2 %v358_v14  ;;  %952 = vmatpush.msrb.mxu3 %v426_v15  ;;  %v350_v21 = vld [vmem:[%s2656_s1 + $0x838] sm:$0xff]  ;;  %v982_v14 = vld [vmem:[%s2658_s3 + $0xa8] sm:$0xff]  ;;  %v963_v15 = vld [vmem:[%s2658_s3 + $0x10] sm:$0xff] }
  0xe4   :  { %877 = vmatmul.f32.vlgmr.msra.gmra.mxu3 %v1646_v6  ;;  %894 = vmatpush.msrb.mxu0 %v226_v16  ;;  %v418_v22 = vld [vmem:[%s2656_s1 + $0xa58] sm:$0xff] }
  0xe5   :  { %912 = vmatpush.msrb.mxu1 %v298_v17  ;;  %934 = vmatpush.msrb.mxu2 %v354_v18  ;;  %v218_v23 = vld [vmem:[%s2656_s1 + $0x418] sm:$0xff]  ;;  %v538_v50 = vpop.f32.mrf.mxu2  ;;  %v981_v18 = vld [vmem:[%s2658_s3 + $0xa0] sm:$0xff] }
  0xe6   :  { %953 = vmatpush.msrb.mxu3 %v422_v0  ;;  %895 = vmatpush.msrb.mxu0 %v222_v19  ;;  %v290_v6 = vld [vmem:[%s2656_s1 + $0x658] sm:$0xff]  ;;  %v962_v19 = vld [vmem:[%s2658_s3 + $0x8] sm:$0xff] }
  0xe7   :  { %v346_v24 = vld [vmem:[%s2656_s1 + $0x818] sm:$0xff]  ;;  %913 = vmatpush.msrb.mxu1 %v294_v20  ;;  %935 = vmatpush.msrb.mxu2 %v350_v21 }
  0xe8   :  { %v414_v26 = vld [vmem:[%s2656_s1 + $0xa38] sm:$0xff]  ;;  %954 = vmatpush.msrb.mxu3 %v418_v22  ;;  %896 = vmatpush.msrb.mxu0 %v218_v23  ;;  %v961_v23 = vld [vmem:[%s2658_s3] sm:$0xff] }
  0xe9   :  { %v976_v27 = vld [vmem:[%s2658_s3 + $0x78] sm:$0xff]  ;;  %914 = vmatpush.msrb.mxu1 %v290_v6  ;;  %936 = vmatpush.msrb.mxu2 %v346_v24  ;;  %v979_v24 = vld [vmem:[%s2658_s3 + $0x90] sm:$0xff] }
  0xea   :  { %v286_v28 = vld [vmem:[%s2656_s1 + $0x638] sm:$0xff]  ;;  %955 = vmatpush.msrb.mxu3 %v414_v26  ;;  %937 = vmatmul.f32.vlgmr.msrb.gmra.mxu2 %v1705_v25  ;;  %v2454_v25 = vld [vmem:[%s2659_s2] sm:$0xf] }
  0xeb   :  { %v410_v30 = vld [vmem:[%s2656_s1 + $0xa18] sm:$0xff]  ;;  %1029 = vmatpush.msra.mxu0 %v976_v27  ;;  %915 = vmatpush.msrb.mxu1 %v286_v28  ;;  %v473_v37 = vperm.slane %v2454_v25, 0  ;;  %v474_v2 = vperm.slane %v2454_v25, 1 }
  0xec   :  { %v282_v32 = vld [vmem:[%s2656_s1 + $0x618] sm:$0xff]  ;;  %956 = vmatpush.msrb.mxu3 %v410_v30  ;;  %897 = vmatmul.f32.vlgmr.msrb.gmra.mxu0 %v1632_v1  ;;  %v973_v1 = vld [vmem:[%s2658_s3 + $0x60] sm:$0xff]  ;;  %v598_v8 = vpop.f32.mrf.mxu1  ;;  %v978_v30 = vld [vmem:[%s2658_s3 + $0x88] sm:$0xff] }
  0xed   :  { %957 = vmatmul.f32.vlgmr.msrb.gmra.mxu3 %v1716_v29  ;;  %1030 = vmatpush.msra.mxu0 %v975_v31  ;;  %v992_v34 = vld [vmem:[%s2658_s3 + $0xf8] sm:$0xff]  ;;  %v991_v29 = vld [vmem:[%s2658_s3 + $0xf0] sm:$0xff] }
  0xee   :  { %916 = vmatpush.msrb.mxu1 %v282_v32  ;;  %v1008_v35 = vld [vmem:[%s2658_s3 + $0x178] sm:$0xff] }
  0xef   :  { %917 = vmatmul.f32.vlgmr.msrb.gmra.mxu1 %v1648_v7  ;;  %1031 = vmatpush.msra.mxu0 %v974_v33  ;;  %v972_v38 = vld [vmem:[%s2658_s3 + $0x58] sm:$0xff]  ;;  %v498_v7 = vpop.f32.mrf.mxu0  ;;  %v977_v33 = vld [vmem:[%s2658_s3 + $0x80] sm:$0xff] }
  0xf0   :  { %1049 = vmatpush.msra.mxu1 %v992_v34  ;;  %1069 = vmatpush.msra.mxu2 %v1008_v35  ;;  %v499_v44 = vadd.f32 %v498_v7, %v473_v37  ;;  %v988_v47 = vld [vmem:[%s2658_s3 + $0xd8] sm:$0xff]  ;;  %v997_v35 = vld [vmem:[%s2658_s3 + $0x120] sm:$0xff]  ;;  %v995_v37 = vld [vmem:[%s2658_s3 + $0x110] sm:$0xff] }
  0xf1   :  { %1032 = vmatpush.msra.mxu0 %v973_v1  ;;  %v1004_v48 = vld [vmem:[%s2658_s3 + $0x158] sm:$0xff]  ;;  %v999_v1 = vld [vmem:[%s2658_s3 + $0x130] sm:$0xff]  ;;  %v993_v7 = vld [vmem:[%s2658_s3 + $0x100] sm:$0xff] }
  0xf2   :  { %1050 = vmatpush.msra.mxu1 %v991_v29  ;;  %1070 = vmatpush.msra.mxu2 %v1007_v36  ;;  %v519_v53 = vadd.f32 %v518_v46, %v499_v44  ;;  %v968_v54 = vld [vmem:[%s2658_s3 + $0x38] sm:$0xff]  ;;  %v998_v29 = vld [vmem:[%s2658_s3 + $0x128] sm:$0xff]  ;;  %v1019_v44 = vld [vmem:[%s2658_s3 + $0x1d0] sm:$0xff] }
  0xf3   :  { %1033 = vmatpush.msra.mxu0 %v972_v38  ;;  %v984_v3 = vld [vmem:[%s2658_s3 + $0xb8] sm:$0xff]  ;;  %v994_v38 = vld [vmem:[%s2658_s3 + $0x108] sm:$0xff]  ;;  %v1017_v46 = vld [vmem:[%s2658_s3 + $0x1c0] sm:$0xff] }
  0xf4   :  { %1051 = vmatpush.msra.mxu1 %v990_v39  ;;  %1071 = vmatpush.msra.mxu2 %v1006_v40  ;;  %v539_v61 = vadd.f32 %v538_v50, %v519_v53  ;;  %v1000_v4 = vld [vmem:[%s2658_s3 + $0x138] sm:$0xff]  ;;  %v1023_v40 = vld [vmem:[%s2658_s3 + $0x1f0] sm:$0xff] }
  0xf5   :  { %1034 = vmatpush.msra.mxu0 %v971_v41  ;;  %v964_v12 = vld [vmem:[%s2658_s3 + $0x18] sm:$0xff]  ;;  %v1022_v41 = vld [vmem:[%s2658_s3 + $0x1e8] sm:$0xff] }
  0xf6   :  { %1052 = vmatpush.msra.mxu1 %v989_v42  ;;  %1072 = vmatpush.msra.mxu2 %v1005_v43  ;;  %v559_v11 = vadd.f32 %v558_v57, %v539_v61  ;;  %v980_v22 = vld [vmem:[%s2658_s3 + $0x98] sm:$0xff]  ;;  %v1021_v42 = vld [vmem:[%s2658_s3 + $0x1e0] sm:$0xff]  ;;  %v1015_v57 = vld [vmem:[%s2658_s3 + $0x1b0] sm:$0xff] }
  0xf7   :  { %1035 = vmatpush.msra.mxu0 %v970_v45  ;;  %v578_v62 = vpop.f32.mrf.mxu0  ;;  %v996_v36 = vld [vmem:[%s2658_s3 + $0x118] sm:$0xff]  ;;  %v1018_v45 = vld [vmem:[%s2658_s3 + $0x1c8] sm:$0xff] }
  0xf8   :  { %1053 = vmatpush.msra.mxu1 %v988_v47  ;;  %1073 = vmatpush.msra.mxu2 %v1004_v48  ;;  %v579_v0 = vadd.f32 %v578_v62, %v559_v11  ;;  %v1024_v39 = vld [vmem:[%s2658_s3 + $0x1f8] sm:$0xff]  ;;  %v475_v47 = vperm.slane %v2454_v25, 2 }
  0xf9   :  { %1036 = vmatpush.msra.mxu0 %v969_v49  ;;  %1089 = vmatpush.msra.mxu3 %v1024_v39  ;;  %v1020_v43 = vld [vmem:[%s2658_s3 + $0x1d8] sm:$0xff] }
  0xfa   :  { %1054 = vmatpush.msra.mxu1 %v987_v51  ;;  %1074 = vmatpush.msra.mxu2 %v1003_v52  ;;  %v599_v26 = vadd.f32 %v598_v8, %v579_v0  ;;  %v1016_v48 = vld [vmem:[%s2658_s3 + $0x1b8] sm:$0xff]  ;;  %v476_v8 = vperm.slane %v2454_v25, 3 }
  0xfb   :  { %1037 = vmatpush.msra.mxu0 %v968_v54  ;;  %1090 = vmatpush.msra.mxu3 %v1023_v40 }
  0xfc   :  { %1055 = vmatpush.msra.mxu1 %v986_v55  ;;  %1075 = vmatpush.msra.mxu2 %v1002_v56 }
  0xfd   :  { %1038 = vmatpush.msra.mxu0 %v967_v58  ;;  %1091 = vmatpush.msra.mxu3 %v1022_v41 }
  0xfe   :  { %1056 = vmatpush.msra.mxu1 %v985_v59  ;;  %1076 = vmatpush.msra.mxu2 %v1001_v60  ;;  %v1014_v60 = vld [vmem:[%s2658_s3 + $0x1a8] sm:$0xff] }
  0xff   :  { %1039 = vmatpush.msra.mxu0 %v966_v63  ;;  %v618_v9 = vpop.f32.mrf.mxu2  ;;  %1092 = vmatpush.msra.mxu3 %v1021_v42  ;;  %v1013_v63 = vld [vmem:[%s2658_s3 + $0x1a0] sm:$0xff] }
 0x100   :  { %1057 = vmatpush.msra.mxu1 %v984_v3  ;;  %v619_v13 = vadd.f32 %v618_v9, %v474_v2  ;;  %1077 = vmatpush.msra.mxu2 %v1000_v4  ;;  %v1012_v2 = vld [vmem:[%s2658_s3 + $0x198] sm:$0xff]  ;;  %v1011_v3 = vld [vmem:[%s2658_s3 + $0x190] sm:$0xff]  ;;  %v1010_v4 = vld [vmem:[%s2658_s3 + $0x188] sm:$0xff] }
 0x101   :  { %1040 = vmatpush.msra.mxu0 %v965_v5  ;;  %1093 = vmatpush.msra.mxu3 %v1020_v43  ;;  %v1009_v5 = vld [vmem:[%s2658_s3 + $0x180] sm:$0xff] }
 0x102   :  { %1058 = vmatpush.msra.mxu1 %v983_v10  ;;  %v638_v16 = vpop.f32.mrf.mxu3  ;;  %1078 = vmatpush.msra.mxu2 %v999_v1  ;;  %v1133_v42 = vld [vmem:[%s2661_s5] sm:$0xff] }
 0x103   :  { %1041 = vmatpush.msra.mxu0 %v964_v12  ;;  %v639_v17 = vadd.f32 %v638_v16, %v619_v13  ;;  %1094 = vmatpush.msra.mxu3 %v1019_v44 }
 0x104   :  { %1059 = vmatpush.msra.mxu1 %v982_v14  ;;  %v658_v20 = vpop.f32.mrf.mxu0  ;;  %1079 = vmatpush.msra.mxu2 %v998_v29 }
 0x105   :  { %1042 = vmatpush.msra.mxu0 %v963_v15  ;;  %v659_v21 = vadd.f32 %v658_v20, %v639_v17  ;;  %1095 = vmatpush.msra.mxu3 %v1018_v45  ;;  %v1201_v20 = vld [vmem:[%s2660_s4] ss:$0 sm:$0xff] }
 0x106   :  { %1060 = vmatpush.msra.mxu1 %v981_v18  ;;  %1080 = vmatpush.msra.mxu2 %v997_v35 }
 0x107   :  { %1043 = vmatpush.msra.mxu0 %v962_v19  ;;  %v678_v6 = vpop.f32.mrf.mxu1  ;;  %1096 = vmatpush.msra.mxu3 %v1017_v46 }
 0x108   :  { %v679_v27 = vadd.f32 %v678_v6, %v659_v21  ;;  %1061 = vmatpush.msra.mxu1 %v980_v22  ;;  %v698_v28 = vpop.f32.mrf.mxu2  ;;  %1081 = vmatpush.msra.mxu2 %v996_v36 }
 0x109   :  { %1044 = vmatpush.msra.mxu0 %v961_v23  ;;  %1097 = vmatpush.msra.mxu3 %v1016_v48 }
 0x10a   :  { %1045 = vmatmul.f32.vlgmr.msra.gmra.mxu0 %v599_v26  ;;  %v699_v31 = vadd.f32 %v698_v28, %v679_v27  ;;  %1062 = vmatpush.msra.mxu1 %v979_v24 }
 0x10b   :  { %v718_v32 = vpop.f32.mrf.mxu3  ;;  %1082 = vmatpush.msra.mxu2 %v995_v37  ;;  %1098 = vmatpush.msra.mxu3 %v1015_v57 }
 0x10c   :  { %v719_v34 = vadd.f32 %v718_v32, %v699_v31  ;;  %1063 = vmatpush.msra.mxu1 %v978_v30 }
 0x10d   :  { %1083 = vmatpush.msra.mxu2 %v994_v38  ;;  %1099 = vmatpush.msra.mxu3 %v1014_v60 }
 0x10e   :  { %1064 = vmatpush.msra.mxu1 %v977_v33 }
 0x10f   :  { %1065 = vmatmul.f32.vlgmr.msra.gmra.mxu1 %v719_v34  ;;  %1084 = vmatpush.msra.mxu2 %v993_v7 }
 0x110   :  { %1100 = vmatpush.msra.mxu3 %v1013_v63 }
 0x112   :  { %1101 = vmatpush.msra.mxu3 %v1012_v2 }
 0x114   :  { %1102 = vmatpush.msra.mxu3 %v1011_v3 }
 0x116   :  { %1103 = vmatpush.msra.mxu3 %v1010_v4 }
 0x118   :  { %1104 = vmatpush.msra.mxu3 %v1009_v5 }
 0x13c   :  { %v738_v49 = vpop.f32.mrf.mxu0 }
 0x13d   :  { %v739_v50 = vadd.f32 %v738_v49, %v475_v47 }
 0x13f   :  { %v758_v51 = vpop.f32.mrf.mxu1 }
 0x140   :  { %v759_v52 = vadd.f32 %v758_v51, %v739_v50  ;;  %v778_v53 = vpop.f32.mrf.mxu2 }
 0x142   :  { %v779_v54 = vadd.f32 %v778_v53, %v759_v52 }
 0x143   :  { %v798_v55 = vpop.f32.mrf.mxu3 }
 0x144   :  { %v799_v56 = vadd.f32 %v798_v55, %v779_v54 }
 0x146   :  { %v818_v58 = vpop.f32.mrf.mxu0 }
 0x147   :  { %v819_v59 = vadd.f32 %v818_v58, %v799_v56 }
 0x148   :  { %v838_v61 = vpop.f32.mrf.mxu1 }
 0x149   :  { %v839_v62 = vadd.f32 %v838_v61, %v819_v59 }
 0x14b   :  { %1085 = vmatmul.f32.vlgmr.msra.gmra.mxu2 %v839_v62 }
 0x164   :  { %v858_v9 = vpop.f32.mrf.mxu2 }
 0x165   :  { %v859_v10 = vadd.f32 %v858_v9, %v476_v8 }
 0x167   :  { %v878_v11 = vpop.f32.mrf.mxu3 }
 0x168   :  { %v879_v12 = vadd.f32 %v878_v11, %v859_v10 }
 0x169   :  { %v898_v13 = vpop.f32.mrf.mxu0 }
 0x16a   :  { %v899_v14 = vadd.f32 %v898_v13, %v879_v12 }
 0x16c   :  { %v918_v15 = vpop.f32.mrf.mxu1 }
 0x16d   :  { %v919_v16 = vadd.f32 %v918_v15, %v899_v14  ;;  %v938_v17 = vpop.f32.mrf.mxu2 }
 0x16f   :  { %v939_v18 = vadd.f32 %v938_v17, %v919_v16 }
 0x170   :  { %v958_v0 = vpop.f32.mrf.mxu3 }
 0x171   :  { %v959_v19 = vadd.f32 %v958_v0, %v939_v18 }
 0x173   :  { %1105 = vmatmul.f32.vlgmr.msra.gmra.mxu3 %v959_v19 }
 0x187   :  { %v1046_v21 = vpop.f32.mrf.mxu0 }
 0x188   :  { %v1047_v25 = vadd.f32 %v1201_v20, %v1046_v21 }
 0x18c   :  { %v1066_v22 = vpop.f32.mrf.mxu1 }
 0x18d   :  { %v1067_v6 = vadd.f32 %v1066_v22, %v1047_v25 }
 0x1ce   :  { %v1086_v23 = vpop.f32.mrf.mxu2 }
 0x1cf   :  { %v1087_v24 = vadd.f32 %v1086_v23, %v1067_v6 }
 0x1f6   :  { %v1106_v26 = vpop.f32.mrf.mxu3 }
 0x1f7   :  { %v1107_v27 = vadd.f32 %v1106_v26, %v1087_v24 }
 0x1f9   :  { %1109 = vmax.xlane.f32.xlu0 %v1107_v27 }
 0x26c   :  { %v1110_v28 = vpop.xlane.xlu0 %1109 }
 0x26d   :  { %v1111_v30 = vsub.f32 %v1107_v27, %v1110_v28 }
 0x26f   :  { %v1112_v31 = vmul.f32 1.442695, %v1111_v30 }
 0x271   :  { %1202 = vpow2.f32 %v1112_v31 }
 0x277   :  { %v1203_v32 = vpop.eup %1202 }
 0x278   :  { %1114 = vadd.xlane.f32.xlu0 %v1203_v32 }
 0x2eb   :  { %v1115_v33 = vpop.xlane.xlu0 %1114 }
 0x2ec   :  { %1204 = vrcp.f32 %v1115_v33  ;;  %v1127_v35 = vand.u32 2147483648, %v1115_v33  ;;  %v1125_v37 = vand.u32 2147483647, %v1115_v33  ;;  %vm1121_vm1 = vweird.f32 %v1115_v33 }
 0x2ee   :  { %v1128_v7 = vor.u32 1.1754944e-38, %v1127_v35  ;;  %vm1126_vm3 = vcmp.eq.f32.partialorder %v1125_v37, 8.507059e+37 }
 0x2f2   :  { %v1205_v34 = vpop.eup %1204 }
 0x2f3   :  { %v1117_v1 = vmul.f32 %v1205_v34, %v1115_v33  ;;  %vm1122_vm0 = vweird.f32 %v1205_v34 }
 0x2f4   :  { %vm1123_vm2 = vmor %vm1121_vm1, %vm1122_vm0 }
 0x2f5   :  { %v1118_v29 = vsub.f32 1.0, %v1117_v1 }
 0x2f7   :  { %v1119_v36 = vmul.f32 %v1205_v34, %v1118_v29 }
 0x2f9   :  { %v1120_v38 = vadd.f32 %v1205_v34, %v1119_v36 }
 0x2fb   :  { %v1124_v39 = vsel %vm1123_vm2, %v1205_v34, %v1120_v38 }
 0x2fc   :  { %v1129_v40 = vsel %vm1126_vm3, %v1128_v7, %v1124_v39 }
 0x2fd   :  { %v1130_v41 = vmul.f32 %v1203_v32, %v1129_v40 }
 0x2ff   :  { %1131 = vst [vmem:[%s2662_s6] sm:$0xff] %v1130_v41  ;;  %1153 = vmatpush.msrb.mxu0 %v1130_v41 }
 0x300   :  { %1199 = vmatmul.msk.f32.vlgmr.msrb.gmra.mxu0 %vm1134_vm4, %v1133_v42 }
 0x37d   :  { %v1155_v43 = vpop.f32.mrf.mxu0 }
 0x37e   :  { %1159 = vst [vmem:[%s2663_s7] sm:$0xff] %v1155_v43 }

</bundles_post_ra>
